<compile_context>
chip_gen: v7x
topology: tpu7x:2x2x1
jax: 0.10.0
libtpu: 0.0.40
codegen_flags: <defaults>
</compile_context>

<pallas_src>
import functools

import jax
import jax.numpy as jnp
from jax.experimental import pallas as pl
from jax.experimental.pallas import tpu as pltpu


# ------------------------------ configuration -------------------------------

C_PAD = 128                       # lane-dense channel padding
STEM_C, EXP_C, BLOCK_C, HEAD_C, OUT_CHANS = 16, 32, 16, 64, 2
VMEM_LIMIT = 32 * 1024 * 1024     # safe on v5e/v6e/v7x
TILE_BUDGET = 12 * 1024 * 1024    # per-call working-set budget for the big operand


def _round_up(x, m):
    return ((x + m - 1) // m) * m


def _pick_m_tile(m, k, cout, budget=TILE_BUDGET, cap=1024):
    # Rows per block: as large as the VMEM budget allows (double-buffered in + out),
    # bounded by `cap`, multiple of 8 sublanes.
    per_row = 2 * (k + cout) * 4
    t = max(8, min(cap, budget // per_row))
    t -= t % 8
    t = max(t, 8)
    return min(t, _round_up(m, 8))


def _pick_spatial_tile(hw, row_bytes, budget=TILE_BUDGET):
    # Spatial rows per block for the fused tail; must divide hw exactly so the GAP
    # accumulator never sees padded rows.
    cap = max(8, (budget // (2 * row_bytes)) // 8 * 8)
    if hw <= cap:
        return hw
    t = cap
    while t >= 8:
        if hw % t == 0:
            return t
        t -= 8
    return hw  # fallback: full spatial extent (legal: equals full dim)


# ----------------------------- Pallas kernels ------------------------------

def _matmul_bn_silu_kernel(x_ref, w_ref, scale_ref, shift_ref, o_ref):
    # y = silu((x @ w) * bn_scale + bn_shift)
    y = jnp.dot(x_ref[...], w_ref[...], preferred_element_type=jnp.float32)
    y = y * scale_ref[...] + shift_ref[...]
    o_ref[...] = (y * jax.nn.sigmoid(y)).astype(o_ref.dtype)


def _block_head_gap_cls_kernel(p_ref,
                               we_ref, es_ref, eb_ref,
                               wp_ref, ps_ref, pb_ref,
                               wh_ref, hs_ref, hb_ref,
                               cw_ref, cb_ref,
                               o_ref, acc_ref, *, inv_hw):
    # Fused: expand conv3x3 + BN + SiLU -> project conv1x1 + BN + residual
    #        -> head conv1x1 + BN + SiLU -> running GAP sum -> classifier.
    s = pl.program_id(0)

    @pl.when(s == 0)
    def _init():
        acc_ref[...] = jnp.zeros_like(acc_ref)

    nb, ts, kdim = p_ref.shape
    xb = p_ref[...].reshape(nb * ts, kdim)

    # FusedMBConv expand conv (3x3, via im2col patches) + BN + SiLU
    y = jnp.dot(xb, we_ref[...], preferred_element_type=jnp.float32)
    y = y * es_ref[...] + eb_ref[...]
    y = y * jax.nn.sigmoid(y)

    # project conv (1x1) + BN + residual.  Residual == original pixel == center tap
    # (i=1, j=1) of the 3x3 patch: static, 128-lane-aligned slice of the patch block.
    z = jnp.dot(y, wp_ref[...], preferred_element_type=jnp.float32)
    z = z * ps_ref[...] + pb_ref[...]
    z = z + xb[:, 4 * C_PAD:5 * C_PAD]

    # head conv (1x1) + BN + SiLU
    h = jnp.dot(z, wh_ref[...], preferred_element_type=jnp.float32)
    h = h * hs_ref[...] + hb_ref[...]
    h = h * jax.nn.sigmoid(h)

    acc_ref[...] += h.reshape(nb, ts, -1).sum(axis=1)    # running GAP sum

    @pl.when(s == pl.num_programs(0) - 1)
    def _finish():
        pooled = acc_ref[...] * inv_hw                   # mean over H*W
        logits = jnp.dot(pooled, cw_ref[...],
                         preferred_element_type=jnp.float32) + cb_ref[...]
        o_ref[...] = logits.astype(o_ref.dtype)


# --------------------------- pallas_call wrappers ---------------------------

def _im2col(x, kh, kw, stride, pad):
    """x: NHWC. Returns patches [N*Ho*Wo, kh*kw*C] (kh,kw outer / C inner)."""
    n, h, w, c = x.shape
    xp = jnp.pad(x, ((0, 0), (pad, pad), (pad, pad), (0, 0)))
    ho = (h + 2 * pad - kh) // stride + 1
    wo = (w + 2 * pad - kw) // stride + 1
    cols = []
    for i in range(kh):
        for j in range(kw):
            cols.append(xp[:, i:i + stride * (ho - 1) + 1:stride,
                           j:j + stride * (wo - 1) + 1:stride, :])
    patches = jnp.concatenate(cols, axis=-1)
    return patches.reshape(n * ho * wo, kh * kw * c), n, ho, wo


def conv_bn_silu(x, w, scale, shift, kh, kw, stride, pad):
    patches, n, ho, wo = _im2col(x, kh, kw, stride, pad)
    m, k = patches.shape
    cout = w.shape[1]                       # already padded to C_PAD

    tile_m = _pick_m_tile(m, k, cout)
    m_pad = _round_up(m, tile_m)
    if m_pad != m:
        patches = jnp.pad(patches, ((0, m_pad - m), (0, 0)))
    grid = (m_pad // tile_m,)

    bytes_accessed = 4 * (m_pad * k + k * cout + 2 * cout + m_pad * cout)
    out = pl.pallas_call(
        _matmul_bn_silu_kernel,
        out_shape=jax.ShapeDtypeStruct((m_pad, cout), jnp.float32),
        grid=grid,
        in_specs=[pl.BlockSpec((tile_m, k), lambda i: (i, 0)),
                  pl.BlockSpec((k, cout), lambda i: (0, 0)),
                  pl.BlockSpec((1, cout), lambda i: (0, 0)),
                  pl.BlockSpec((1, cout), lambda i: (0, 0))],
        out_specs=pl.BlockSpec((tile_m, cout), lambda i: (i, 0)),
        compiler_params=pltpu.CompilerParams(
            dimension_semantics=("parallel",),
            vmem_limit_bytes=VMEM_LIMIT),
        cost_estimate=pl.CostEstimate(
            flops=2 * m_pad * k * cout,
            transcendentals=m_pad * cout,
            bytes_accessed=bytes_accessed),
    )(patches, w, scale, shift)
    return out[:m].reshape(n, ho, wo, cout)


def block_head_gap_classifier(x, p):
    """FusedMBConv block (+residual) + head conv + GAP + classifier in one call."""
    n, h, w, c = x.shape
    hw = h * w
    patches, _, ho, wo = _im2col(x, 3, 3, 1, 1)          # (n*hw, 9*C_PAD)
    assert ho == h and wo == w
    k = patches.shape[1]
    pr = patches.reshape(n, hw, k)

    tile_s = _pick_spatial_tile(hw, n * k * 4)
    grid = (hw // tile_s,)
    m = n * hw

    kernel = functools.partial(_block_head_gap_cls_kernel, inv_hw=1.0 / hw)
    bytes_accessed = 4 * (n * hw * k + k * C_PAD + 3 * C_PAD * C_PAD
                          + 7 * C_PAD + n * C_PAD)
    flops = 2 * m * (k * C_PAD + 2 * C_PAD * C_PAD) + 2 * n * C_PAD * C_PAD
    return pl.pallas_call(
        kernel,
        out_shape=jax.ShapeDtypeStruct((n, C_PAD), jnp.float32),
        grid=grid,
        in_specs=[pl.BlockSpec((n, tile_s, k), lambda s: (0, s, 0)),
                  pl.BlockSpec((k, C_PAD), lambda s: (0, 0)),
                  pl.BlockSpec((1, C_PAD), lambda s: (0, 0)),
                  pl.BlockSpec((1, C_PAD), lambda s: (0, 0)),
                  pl.BlockSpec((C_PAD, C_PAD), lambda s: (0, 0)),
                  pl.BlockSpec((1, C_PAD), lambda s: (0, 0)),
                  pl.BlockSpec((1, C_PAD), lambda s: (0, 0)),
                  pl.BlockSpec((C_PAD, C_PAD), lambda s: (0, 0)),
                  pl.BlockSpec((1, C_PAD), lambda s: (0, 0)),
                  pl.BlockSpec((1, C_PAD), lambda s: (0, 0)),
                  pl.BlockSpec((C_PAD, C_PAD), lambda s: (0, 0)),
                  pl.BlockSpec((1, C_PAD), lambda s: (0, 0))],
        out_specs=pl.BlockSpec((n, C_PAD), lambda s: (0, 0)),
        scratch_shapes=[pltpu.VMEM((n, C_PAD), jnp.float32)],
        compiler_params=pltpu.CompilerParams(
            dimension_semantics=("arbitrary",),   # spatial axis is a GAP reduction
            vmem_limit_bytes=VMEM_LIMIT),
        cost_estimate=pl.CostEstimate(
            flops=flops,
            transcendentals=2 * m * C_PAD,
            bytes_accessed=bytes_accessed),
    )(pr,
      p["exp_w"], p["exp_scale"], p["exp_shift"],
      p["proj_w"], p["proj_scale"], p["proj_shift"],
      p["head_w"], p["head_scale"], p["head_shift"],
      p["cls_w"], p["cls_b"])


# --------------------------- parameter construction -------------------------

def _bn_fold(key, c, eps=1e-3):
    # timm "tf_" EfficientNetV2 variants use eps=1e-3 (non-tf variants use 1e-5).
    k1, k2, k3, k4 = jax.random.split(key, 4)
    gamma = 1.0 + 0.1 * jax.random.normal(k1, (c,), jnp.float32)
    beta = 0.1 * jax.random.normal(k2, (c,), jnp.float32)
    mean = 0.1 * jax.random.normal(k3, (c,), jnp.float32)
    var = jnp.abs(jax.random.normal(k4, (c,), jnp.float32)) + 1.0
    scale = gamma * jax.lax.rsqrt(var + eps)
    shift = beta - mean * scale
    # Zero-pad to 128 lanes: padded channels stay exactly 0 (silu(0)=0) downstream.
    scale_p = jnp.zeros((1, C_PAD), jnp.float32).at[0, :c].set(scale)
    shift_p = jnp.zeros((1, C_PAD), jnp.float32).at[0, :c].set(shift)
    return scale_p, shift_p


def _conv_w(key, cin, cout, kh, kw, cin_pad=None):
    # torch conv weight [cout, cin, kh, kw] -> im2col layout [kh*kw*cin_pad, C_PAD]
    cin_pad = cin if cin_pad is None else cin_pad
    w = 0.1 * jax.random.normal(key, (cout, cin, kh, kw), jnp.float32)
    w = jnp.transpose(w, (2, 3, 1, 0))                          # (kh, kw, cin, cout)
    w = jnp.pad(w, ((0, 0), (0, 0), (0, cin_pad - cin), (0, C_PAD - cout)))
    return w.reshape(kh * kw * cin_pad, C_PAD)


def init_params(key):
    ks = jax.random.split(key, 10)
    p = {}
    p["stem_w"] = _conv_w(ks[0], 3, STEM_C, 3, 3, cin_pad=3)          # (27, 128)
    p["stem_scale"], p["stem_shift"] = _bn_fold(ks[1], STEM_C)
    p["exp_w"] = _conv_w(ks[2], STEM_C, EXP_C, 3, 3, cin_pad=C_PAD)   # (1152, 128)
    p["exp_scale"], p["exp_shift"] = _bn_fold(ks[3], EXP_C)
    p["proj_w"] = _conv_w(ks[4], EXP_C, BLOCK_C, 1, 1, cin_pad=C_PAD)  # (128, 128)
    p["proj_scale"], p["proj_shift"] = _bn_fold(ks[5], BLOCK_C)
    p["head_w"] = _conv_w(ks[6], BLOCK_C, HEAD_C, 1, 1, cin_pad=C_PAD)  # (128, 128)
    p["head_scale"], p["head_shift"] = _bn_fold(ks[7], HEAD_C)
    # classifier: torch Linear weight [out, in] -> (in, out), padded to (128, 128)
    wc = 0.1 * jax.random.normal(ks[8], (OUT_CHANS, HEAD_C), jnp.float32)
    p["cls_w"] = jnp.pad(wc.T, ((0, C_PAD - HEAD_C), (0, C_PAD - OUT_CHANS)))
    bc = 0.1 * jax.random.normal(ks[9], (OUT_CHANS,), jnp.float32)
    p["cls_b"] = jnp.zeros((1, C_PAD), jnp.float32).at[0, :OUT_CHANS].set(bc)
    return p


# --------------------------------- forward ----------------------------------

def isic_model_forward(params, x_nchw):
    x = jnp.transpose(x_nchw, (0, 2, 3, 1))  # NCHW -> NHWC (channels on lanes)
    # stem conv3x3 stride 2 + BN + SiLU
    x = conv_bn_silu(x, params["stem_w"], params["stem_scale"], params["stem_shift"],
                     3, 3, 2, 1)
    # Fused tail: FusedMBConv (expand 3x3 + BN + SiLU, 1x1 project + BN, + residual)
    # -> head 1x1 conv + BN + SiLU -> GAP -> classifier Linear(+bias), one pallas_call.
    # TODO(synk): drop_rate / drop_path_rate are train-time stochastic regularizers;
    #             eval-mode forward => identity (nothing to compute).
    logits_pad = block_head_gap_classifier(x, params)
    return logits_pad[:, :OUT_CHANS]         # slice padded lanes off once at the end


if __name__ == "__main__":
    key = jax.random.PRNGKey(0)
    params = init_params(key)
    x = jax.random.normal(jax.random.fold_in(key, 999), (2, 3, 16, 16), jnp.float32)

    logits = jax.jit(isic_model_forward)(params, x)
    jax.block_until_ready(logits)
    assert logits.shape == (2, OUT_CHANS), logits.shape
    assert logits.dtype == jnp.float32
    assert bool(jnp.all(jnp.isfinite(logits)))
    print("KERNEL_OK")
</pallas_src>

<mosaic_0001>
module attributes {stable_mosaic.version = 11 : i64} {
  func.func @_matmul_bn_silu_kernel(%arg0: i32, %arg1: memref<128x27xf32, #tpu.memory_space<vmem>>, %arg2: memref<27x128xf32, #tpu.memory_space<vmem>>, %arg3: memref<1x128xf32, #tpu.memory_space<vmem>>, %arg4: memref<1x128xf32, #tpu.memory_space<vmem>>, %arg5: memref<128x128xf32, #tpu.memory_space<vmem>>) attributes {dimension_semantics = [#tpu.dimension_semantics<parallel>], iteration_bounds = array<i64: 1>, scalar_prefetch = 0 : i64, scratch_operands = 0 : i64, tpu.core_type = #tpu.core_type<tc>, window_params = [{transform_indices = @transform_0, window_bounds = array<i64: 128, 27>}, {pipeline_mode = #tpu.pipeline_mode<synchronous>, transform_indices = @transform_1, window_bounds = array<i64: 27, 128>}, {pipeline_mode = #tpu.pipeline_mode<synchronous>, transform_indices = @transform_2, window_bounds = array<i64: 1, 128>}, {pipeline_mode = #tpu.pipeline_mode<synchronous>, transform_indices = @transform_3, window_bounds = array<i64: 1, 128>}, {transform_indices = @transform_4, window_bounds = array<i64: 128, 128>}]} {
    %c0 = arith.constant 0 : index
    %c0_0 = arith.constant 0 : index
    %0 = vector.load %arg1[%c0, %c0_0] : memref<128x27xf32, #tpu.memory_space<vmem>>, vector<128x27xf32>
    %c0_1 = arith.constant 0 : index
    %c0_2 = arith.constant 0 : index
    %1 = vector.load %arg2[%c0_1, %c0_2] : memref<27x128xf32, #tpu.memory_space<vmem>>, vector<27x128xf32>
    %cst = arith.constant dense<0.000000e+00> : vector<128x128xf32>
    %2 = tpu.matmul %0, %1, %cst {dimension_numbers = #tpu.dot_dimension_numbers<[1], [0], [0], [1], [0, 0, 1, 1], [], []>} : vector<128x27xf32>, vector<27x128xf32>, vector<128x128xf32> -> vector<128x128xf32>
    %c0_3 = arith.constant 0 : index
    %c0_4 = arith.constant 0 : index
    %3 = vector.load %arg3[%c0_3, %c0_4] : memref<1x128xf32, #tpu.memory_space<vmem>>, vector<1x128xf32>
    %4 = vector.broadcast %3 : vector<1x128xf32> to vector<128x128xf32>
    %5 = arith.mulf %2, %4 : vector<128x128xf32>
    %c0_5 = arith.constant 0 : index
    %c0_6 = arith.constant 0 : index
    %6 = vector.load %arg4[%c0_5, %c0_6] : memref<1x128xf32, #tpu.memory_space<vmem>>, vector<1x128xf32>
    %7 = vector.broadcast %6 : vector<1x128xf32> to vector<128x128xf32>
    %8 = arith.addf %5, %7 : vector<128x128xf32>
    %9 = arith.negf %8 : vector<128x128xf32>
    %10 = math.exp %9 : vector<128x128xf32>
    %cst_7 = arith.constant 1.000000e+00 : f32
    %11 = vector.broadcast %cst_7 : f32 to vector<128x128xf32>
    %12 = arith.addf %11, %10 : vector<128x128xf32>
    %13 = arith.divf %11, %12 : vector<128x128xf32>
    %14 = arith.mulf %8, %13 : vector<128x128xf32>
    %c0_8 = arith.constant 0 : index
    %c0_9 = arith.constant 0 : index
    %15 = vector.load %arg5[%c0_8, %c0_9] : memref<128x128xf32, #tpu.memory_space<vmem>>, vector<128x128xf32>
    tpu.vector_store %arg5[%c0_8, %c0_9], %14 {strides = array<i32>} : memref<128x128xf32, #tpu.memory_space<vmem>>, vector<128x128xf32>,
    return
  }
  func.func @transform_0(%arg0: i32) -> (i32, i32) {
    %c0_i32 = arith.constant 0 : i32
    %c0_i32_0 = arith.constant 0 : i32
    return %arg0, %c0_i32 : i32, i32
  }
  func.func @transform_1(%arg0: i32) -> (i32, i32) {
    %c0_i32 = arith.constant 0 : i32
    %c0_i32_0 = arith.constant 0 : i32
    %c0_i32_1 = arith.constant 0 : i32
    return %c0_i32, %c0_i32_0 : i32, i32
  }
  func.func @transform_2(%arg0: i32) -> (i32, i32) {
    %c0_i32 = arith.constant 0 : i32
    %c0_i32_0 = arith.constant 0 : i32
    %c0_i32_1 = arith.constant 0 : i32
    return %c0_i32, %c0_i32_0 : i32, i32
  }
  func.func @transform_3(%arg0: i32) -> (i32, i32) {
    %c0_i32 = arith.constant 0 : i32
    %c0_i32_0 = arith.constant 0 : i32
    %c0_i32_1 = arith.constant 0 : i32
    return %c0_i32, %c0_i32_0 : i32, i32
  }
  func.func @transform_4(%arg0: i32) -> (i32, i32) {
    %c0_i32 = arith.constant 0 : i32
    %c0_i32_0 = arith.constant 0 : i32
    return %arg0, %c0_i32 : i32, i32
  }
}

module attributes {stable_mosaic.version = 11 : i64} {
  func.func @_block_head_gap_cls_kernel(%arg0: i32, %arg1: memref<2x64x1152xf32, #tpu.memory_space<vmem>>, %arg2: memref<1152x128xf32, #tpu.memory_space<vmem>>, %arg3: memref<1x128xf32, #tpu.memory_space<vmem>>, %arg4: memref<1x128xf32, #tpu.memory_space<vmem>>, %arg5: memref<128x128xf32, #tpu.memory_space<vmem>>, %arg6: memref<1x128xf32, #tpu.memory_space<vmem>>, %arg7: memref<1x128xf32, #tpu.memory_space<vmem>>, %arg8: memref<128x128xf32, #tpu.memory_space<vmem>>, %arg9: memref<1x128xf32, #tpu.memory_space<vmem>>, %arg10: memref<1x128xf32, #tpu.memory_space<vmem>>, %arg11: memref<128x128xf32, #tpu.memory_space<vmem>>, %arg12: memref<1x128xf32, #tpu.memory_space<vmem>>, %arg13: memref<2x128xf32, #tpu.memory_space<vmem>>, %arg14: memref<2x128xf32, #tpu.memory_space<vmem>>) attributes {dimension_semantics = [#tpu.dimension_semantics<arbitrary>], iteration_bounds = array<i64: 1>, scalar_prefetch = 0 : i64, scratch_operands = 1 : i64, tpu.core_type = #tpu.core_type<tc>, window_params = [{transform_indices = @transform_0, window_bounds = array<i64: 2, 64, 1152>}, {pipeline_mode = #tpu.pipeline_mode<synchronous>, transform_indices = @transform_1, window_bounds = array<i64: 1152, 128>}, {pipeline_mode = #tpu.pipeline_mode<synchronous>, transform_indices = @transform_2, window_bounds = array<i64: 1, 128>}, {pipeline_mode = #tpu.pipeline_mode<synchronous>, transform_indices = @transform_3, window_bounds = array<i64: 1, 128>}, {pipeline_mode = #tpu.pipeline_mode<synchronous>, transform_indices = @transform_4, window_bounds = array<i64: 128, 128>}, {pipeline_mode = #tpu.pipeline_mode<synchronous>, transform_indices = @transform_5, window_bounds = array<i64: 1, 128>}, {pipeline_mode = #tpu.pipeline_mode<synchronous>, transform_indices = @transform_6, window_bounds = array<i64: 1, 128>}, {pipeline_mode = #tpu.pipeline_mode<synchronous>, transform_indices = @transform_7, window_bounds = array<i64: 128, 128>}, {pipeline_mode = #tpu.pipeline_mode<synchronous>, transform_indices = @transform_8, window_bounds = array<i64: 1, 128>}, {pipeline_mode = #tpu.pipeline_mode<synchronous>, transform_indices = @transform_9, window_bounds = array<i64: 1, 128>}, {pipeline_mode = #tpu.pipeline_mode<synchronous>, transform_indices = @transform_10, window_bounds = array<i64: 128, 128>}, {pipeline_mode = #tpu.pipeline_mode<synchronous>, transform_indices = @transform_11, window_bounds = array<i64: 1, 128>}, {pipeline_mode = #tpu.pipeline_mode<synchronous>, transform_indices = @transform_12, window_bounds = array<i64: 2, 128>}]} {
    %c0_i32 = arith.constant 0 : i32
    %0 = arith.cmpi eq, %arg0, %c0_i32 : i32
    %1 = arith.extui %0 : i1 to i32
    %c0_i32_0 = arith.constant 0 : i32
    %2 = arith.cmpi ne, %1, %c0_i32_0 : i32
    scf.if %2 {
      %cst_32 = arith.constant 0.000000e+00 : f32
      %51 = vector.broadcast %cst_32 : f32 to vector<2x128xf32>
      %c0_33 = arith.constant 0 : index
      %c0_34 = arith.constant 0 : index
      %52 = vector.load %arg14[%c0_33, %c0_34] : memref<2x128xf32, #tpu.memory_space<vmem>>, vector<2x128xf32>
      tpu.vector_store %arg14[%c0_33, %c0_34], %51 {strides = array<i32>} : memref<2x128xf32, #tpu.memory_space<vmem>>, vector<2x128xf32>,
    } else {
    }
    %c0 = arith.constant 0 : index
    %c0_1 = arith.constant 0 : index
    %c0_2 = arith.constant 0 : index
    %3 = vector.load %arg1[%c0, %c0_1, %c0_2] : memref<2x64x1152xf32, #tpu.memory_space<vmem>>, vector<2x64x1152xf32>
    %4 = vector.shape_cast %3 : vector<2x64x1152xf32> to vector<128x1152xf32>
    %c0_3 = arith.constant 0 : index
    %c0_4 = arith.constant 0 : index
    %5 = vector.load %arg2[%c0_3, %c0_4] : memref<1152x128xf32, #tpu.memory_space<vmem>>, vector<1152x128xf32>
    %cst = arith.constant dense<0.000000e+00> : vector<128x128xf32>
    %6 = tpu.matmul %4, %5, %cst {dimension_numbers = #tpu.dot_dimension_numbers<[1], [0], [0], [1], [0, 0, 1, 1], [], []>} : vector<128x1152xf32>, vector<1152x128xf32>, vector<128x128xf32> -> vector<128x128xf32>
    %c0_5 = arith.constant 0 : index
    %c0_6 = arith.constant 0 : index
    %7 = vector.load %arg3[%c0_5, %c0_6] : memref<1x128xf32, #tpu.memory_space<vmem>>, vector<1x128xf32>
    %8 = vector.broadcast %7 : vector<1x128xf32> to vector<128x128xf32>
    %9 = arith.mulf %6, %8 : vector<128x128xf32>
    %c0_7 = arith.constant 0 : index
    %c0_8 = arith.constant 0 : index
    %10 = vector.load %arg4[%c0_7, %c0_8] : memref<1x128xf32, #tpu.memory_space<vmem>>, vector<1x128xf32>
    %11 = vector.broadcast %10 : vector<1x128xf32> to vector<128x128xf32>
    %12 = arith.addf %9, %11 : vector<128x128xf32>
    %13 = arith.negf %12 : vector<128x128xf32>
    %14 = math.exp %13 : vector<128x128xf32>
    %cst_9 = arith.constant 1.000000e+00 : f32
    %15 = vector.broadcast %cst_9 : f32 to vector<128x128xf32>
    %16 = arith.addf %15, %14 : vector<128x128xf32>
    %17 = arith.divf %15, %16 : vector<128x128xf32>
    %18 = arith.mulf %12, %17 : vector<128x128xf32>
    %c0_10 = arith.constant 0 : index
    %c0_11 = arith.constant 0 : index
    %19 = vector.load %arg5[%c0_10, %c0_11] : memref<128x128xf32, #tpu.memory_space<vmem>>, vector<128x128xf32>
    %cst_12 = arith.constant dense<0.000000e+00> : vector<128x128xf32>
    %20 = tpu.matmul %18, %19, %cst_12 {dimension_numbers = #tpu.dot_dimension_numbers<[1], [0], [0], [1], [0, 0, 1, 1], [], []>} : vector<128x128xf32>, vector<128x128xf32>, vector<128x128xf32> -> vector<128x128xf32>
    %c0_13 = arith.constant 0 : index
    %c0_14 = arith.constant 0 : index
    %21 = vector.load %arg6[%c0_13, %c0_14] : memref<1x128xf32, #tpu.memory_space<vmem>>, vector<1x128xf32>
    %22 = vector.broadcast %21 : vector<1x128xf32> to vector<128x128xf32>
    %23 = arith.mulf %20, %22 : vector<128x128xf32>
    %c0_15 = arith.constant 0 : index
    %c0_16 = arith.constant 0 : index
    %24 = vector.load %arg7[%c0_15, %c0_16] : memref<1x128xf32, #tpu.memory_space<vmem>>, vector<1x128xf32>
    %25 = vector.broadcast %24 : vector<1x128xf32> to vector<128x128xf32>
    %26 = arith.addf %23, %25 : vector<128x128xf32>
    %27 = vector.extract_strided_slice %4 {offsets = [0, 512], sizes = [128, 128], strides = [1, 1]} : vector<128x1152xf32> to vector<128x128xf32>
    %28 = arith.addf %26, %27 : vector<128x128xf32>
    %c0_17 = arith.constant 0 : index
    %c0_18 = arith.constant 0 : index
    %29 = vector.load %arg8[%c0_17, %c0_18] : memref<128x128xf32, #tpu.memory_space<vmem>>, vector<128x128xf32>
    %cst_19 = arith.constant dense<0.000000e+00> : vector<128x128xf32>
    %30 = tpu.matmul %28, %29, %cst_19 {dimension_numbers = #tpu.dot_dimension_numbers<[1], [0], [0], [1], [0, 0, 1, 1], [], []>} : vector<128x128xf32>, vector<128x128xf32>, vector<128x128xf32> -> vector<128x128xf32>
    %c0_20 = arith.constant 0 : index
    %c0_21 = arith.constant 0 : index
    %31 = vector.load %arg9[%c0_20, %c0_21] : memref<1x128xf32, #tpu.memory_space<vmem>>, vector<1x128xf32>
    %32 = vector.broadcast %31 : vector<1x128xf32> to vector<128x128xf32>
    %33 = arith.mulf %30, %32 : vector<128x128xf32>
    %c0_22 = arith.constant 0 : index
    %c0_23 = arith.constant 0 : index
    %34 = vector.load %arg10[%c0_22, %c0_23] : memref<1x128xf32, #tpu.memory_space<vmem>>, vector<1x128xf32>
    %35 = vector.broadcast %34 : vector<1x128xf32> to vector<128x128xf32>
    %36 = arith.addf %33, %35 : vector<128x128xf32>
    %37 = arith.negf %36 : vector<128x128xf32>
    %38 = math.exp %37 : vector<128x128xf32>
    %cst_24 = arith.constant 1.000000e+00 : f32
    %39 = vector.broadcast %cst_24 : f32 to vector<128x128xf32>
    %40 = arith.addf %39, %38 : vector<128x128xf32>
    %41 = arith.divf %39, %40 : vector<128x128xf32>
    %42 = arith.mulf %36, %41 : vector<128x128xf32>
    %c0_25 = arith.constant 0 : index
    %c0_26 = arith.constant 0 : index
    %43 = vector.load %arg14[%c0_25, %c0_26] : memref<2x128xf32, #tpu.memory_space<vmem>>, vector<2x128xf32>
    %44 = vector.shape_cast %42 : vector<128x128xf32> to vector<2x64x128xf32>
    %cst_27 = arith.constant dense<0.000000e+00> : vector<2x128xf32>
    %45 = vector.multi_reduction <add>, %44, %cst_27 [1] : vector<2x64x128xf32> to vector<2x128xf32>
    %46 = arith.addf %43, %45 : vector<2x128xf32>
    %c0_28 = arith.constant 0 : index
    %c0_29 = arith.constant 0 : index
    %47 = vector.load %arg14[%c0_28, %c0_29] : memref<2x128xf32, #tpu.memory_space<vmem>>, vector<2x128xf32>
    tpu.vector_store %arg14[%c0_28, %c0_29], %46 {strides = array<i32>} : memref<2x128xf32, #tpu.memory_space<vmem>>, vector<2x128xf32>,
    %c0_i32_30 = arith.constant 0 : i32
    %48 = arith.cmpi eq, %arg0, %c0_i32_30 : i32
    %49 = arith.extui %48 : i1 to i32
    %c0_i32_31 = arith.constant 0 : i32
    %50 = arith.cmpi ne, %49, %c0_i32_31 : i32
    scf.if %50 {
      %c0_32 = arith.constant 0 : index
      %c0_33 = arith.constant 0 : index
      %51 = vector.load %arg14[%c0_32, %c0_33] : memref<2x128xf32, #tpu.memory_space<vmem>>, vector<2x128xf32>
      %cst_34 = arith.constant 1.562500e-02 : f32
      %52 = vector.broadcast %cst_34 : f32 to vector<2x128xf32>
      %53 = arith.mulf %51, %52 : vector<2x128xf32>
      %c0_35 = arith.constant 0 : index
      %c0_36 = arith.constant 0 : index
      %54 = vector.load %arg11[%c0_35, %c0_36] : memref<128x128xf32, #tpu.memory_space<vmem>>, vector<128x128xf32>
      %cst_37 = arith.constant dense<0.000000e+00> : vector<2x128xf32>
      %55 = tpu.matmul %53, %54, %cst_37 {dimension_numbers = #tpu.dot_dimension_numbers<[1], [0], [0], [1], [0, 0, 1, 1], [], []>} : vector<2x128xf32>, vector<128x128xf32>, vector<2x128xf32> -> vector<2x128xf32>
      %c0_38 = arith.constant 0 : index
      %c0_39 = arith.constant 0 : index
      %56 = vector.load %arg12[%c0_38, %c0_39] : memref<1x128xf32, #tpu.memory_space<vmem>>, vector<1x128xf32>
      %57 = vector.broadcast %56 : vector<1x128xf32> to vector<2x128xf32>
      %58 = arith.addf %55, %57 : vector<2x128xf32>
      %c0_40 = arith.constant 0 : index
      %c0_41 = arith.constant 0 : index
      %59 = vector.load %arg13[%c0_40, %c0_41] : memref<2x128xf32, #tpu.memory_space<vmem>>, vector<2x128xf32>
      tpu.vector_store %arg13[%c0_40, %c0_41], %58 {strides = array<i32>} : memref<2x128xf32, #tpu.memory_space<vmem>>, vector<2x128xf32>,
    } else {
    }
    return
  }
  func.func @transform_0(%arg0: i32) -> (i32, i32, i32) {
    %c0_i32 = arith.constant 0 : i32
    %c0_i32_0 = arith.constant 0 : i32
    %c0_i32_1 = arith.constant 0 : i32
    return %c0_i32, %arg0, %c0_i32_0 : i32, i32, i32
  }
  func.func @transform_1(%arg0: i32) -> (i32, i32) {
    %c0_i32 = arith.constant 0 : i32
    %c0_i32_0 = arith.constant 0 : i32
    %c0_i32_1 = arith.constant 0 : i32
    return %c0_i32, %c0_i32_0 : i32, i32
  }
  func.func @transform_2(%arg0: i32) -> (i32, i32) {
    %c0_i32 = arith.constant 0 : i32
    %c0_i32_0 = arith.constant 0 : i32
    %c0_i32_1 = arith.constant 0 : i32
    return %c0_i32, %c0_i32_0 : i32, i32
  }
  func.func @transform_3(%arg0: i32) -> (i32, i32) {
    %c0_i32 = arith.constant 0 : i32
    %c0_i32_0 = arith.constant 0 : i32
    %c0_i32_1 = arith.constant 0 : i32
    return %c0_i32, %c0_i32_0 : i32, i32
  }
  func.func @transform_4(%arg0: i32) -> (i32, i32) {
    %c0_i32 = arith.constant 0 : i32
    %c0_i32_0 = arith.constant 0 : i32
    %c0_i32_1 = arith.constant 0 : i32
    return %c0_i32, %c0_i32_0 : i32, i32
  }
  func.func @transform_5(%arg0: i32) -> (i32, i32) {
    %c0_i32 = arith.constant 0 : i32
    %c0_i32_0 = arith.constant 0 : i32
    %c0_i32_1 = arith.constant 0 : i32
    return %c0_i32, %c0_i32_0 : i32, i32
  }
  func.func @transform_6(%arg0: i32) -> (i32, i32) {
    %c0_i32 = arith.constant 0 : i32
    %c0_i32_0 = arith.constant 0 : i32
    %c0_i32_1 = arith.constant 0 : i32
    return %c0_i32, %c0_i32_0 : i32, i32
  }
  func.func @transform_7(%arg0: i32) -> (i32, i32) {
    %c0_i32 = arith.constant 0 : i32
    %c0_i32_0 = arith.constant 0 : i32
    %c0_i32_1 = arith.constant 0 : i32
    return %c0_i32, %c0_i32_0 : i32, i32
  }
  func.func @transform_8(%arg0: i32) -> (i32, i32) {
    %c0_i32 = arith.constant 0 : i32
    %c0_i32_0 = arith.constant 0 : i32
    %c0_i32_1 = arith.constant 0 : i32
    return %c0_i32, %c0_i32_0 : i32, i32
  }
  func.func @transform_9(%arg0: i32) -> (i32, i32) {
    %c0_i32 = arith.constant 0 : i32
    %c0_i32_0 = arith.constant 0 : i32
    %c0_i32_1 = arith.constant 0 : i32
    return %c0_i32, %c0_i32_0 : i32, i32
  }
  func.func @transform_10(%arg0: i32) -> (i32, i32) {
    %c0_i32 = arith.constant 0 : i32
    %c0_i32_0 = arith.constant 0 : i32
    %c0_i32_1 = arith.constant 0 : i32
    return %c0_i32, %c0_i32_0 : i32, i32
  }
  func.func @transform_11(%arg0: i32) -> (i32, i32) {
    %c0_i32 = arith.constant 0 : i32
    %c0_i32_0 = arith.constant 0 : i32
    %c0_i32_1 = arith.constant 0 : i32
    return %c0_i32, %c0_i32_0 : i32, i32
  }
  func.func @transform_12(%arg0: i32) -> (i32, i32) {
    %c0_i32 = arith.constant 0 : i32
    %c0_i32_0 = arith.constant 0 : i32
    %c0_i32_1 = arith.constant 0 : i32
    return %c0_i32, %c0_i32_0 : i32, i32
  }
}

</mosaic_0001>

<bundles_post_ra>
// kernel: isic_model_forward.2
= control target key start
LH: loop header
LB: loop body
LE: loop exit
PB: predicated region body
PF: predicated region fallthrough
CT: control target
= control target key end

     0   :  { %vm86_vm0 = vcmask 1042432   ;;  %vm37_vm1 = vcmask 220160   ;;  %vm579_vm2 = vmmov 1   ;;  %s835_s1 = inlined_call_operand.vmem [shape: f32[27,128], index: 1, kind: input, shape index: {}]   ;;  %s836_s0 = inlined_call_operand.vmem [shape: f32[128,27], index: 0, kind: input, shape index: {}]   ;;  %s837_s2 = inlined_call_operand.vmem [shape: f32[1,128], index: 2, kind: input, shape index: {}]   ;;  %s838_s3 = inlined_call_operand.vmem [shape: f32[1,128], index: 3, kind: input, shape index: {}]   ;;  %s839_s4 = inlined_call_operand.vmem [shape: f32[128,128], index: 4, kind: output, shape index: {}]  }
   0x1   :  { %v33_v0 = vld [vmem:[%s835_s1] sm:$0xff]  ;;  %v34_v1 = vld [vmem:[%s835_s1 + $0x8] sm:$0xff]  ;;  %v35_v2 = vld [vmem:[%s835_s1 + $0x10] sm:$0xff] }
   0x2   :  { %v500_v3 = vpack.c.bf16 %v34_v1, %v33_v0  ;;  %v36_v4 = vld [vmem:[%s835_s1 + $0x18] sm:$0x7]  ;;  %v17_v5 = vld [vmem:[%s836_s0] sm:$0xff]  ;;  %vm505_vm3 = vmpackc.low %vm86_vm0, %vm579_vm2 }
   0x3   :  { %v504_v6 = vpack.c.bf16 %v36_v4, %v35_v2  ;;  %476 = vmatprep.mubr.msk.f32.mxu0 %vm37_vm1, %v17_v5  ;;  %v25_v7 = vld [vmem:[%s836_s0 + $0x40] sm:$0xff]  ;;  %v18_v8 = vld [vmem:[%s836_s0 + $0x8] sm:$0xff]  ;;  %v19_v10 = vld [vmem:[%s836_s0 + $0x10] sm:$0xff] }
   0x4   :  { %501 = vmatprep.subr.bf16.mxu0 %v500_v3  ;;  %510 = vmatprep.subr.bf16.mxu1 %v500_v3  ;;  %v26_v9 = vld [vmem:[%s836_s0 + $0x48] sm:$0xff]  ;;  %v27_v11 = vld [vmem:[%s836_s0 + $0x50] sm:$0xff]  ;;  %v20_v12 = vld [vmem:[%s836_s0 + $0x18] sm:$0xff] }
   0x5   :  { %503 = vmatpush3.bf16.msra.mxu0 %v500_v3  ;;  %512 = vmatpush3.bf16.msra.mxu1 %v500_v3  ;;  %v28_v13 = vld [vmem:[%s836_s0 + $0x58] sm:$0xff]  ;;  %v21_v14 = vld [vmem:[%s836_s0 + $0x20] sm:$0xff]  ;;  %v22_v16 = vld [vmem:[%s836_s0 + $0x28] sm:$0xff] }
   0x6   :  { %506 = vmatprep.subr.msk.bf16.mxu0 %vm505_vm3, %v504_v6  ;;  %511 = vmatprep.subr.msk.bf16.mxu1 %vm505_vm3, %v504_v6  ;;  %v29_v15 = vld [vmem:[%s836_s0 + $0x60] sm:$0xff]  ;;  %v30_v17 = vld [vmem:[%s836_s0 + $0x68] sm:$0xff]  ;;  %v23_v18 = vld [vmem:[%s836_s0 + $0x30] sm:$0xff] }
   0x7   :  { %488 = vmatprep.mubr.msk.f32.mxu1 %vm37_vm1, %v25_v7  ;;  %v31_v19 = vld [vmem:[%s836_s0 + $0x70] sm:$0xff]  ;;  %v24_v20 = vld [vmem:[%s836_s0 + $0x38] sm:$0xff]  ;;  %v684_v22 = vld [vmem:[%s837_s2] ss:$0 sm:$0xff] }
   0x8   :  { %v32_v21 = vld [vmem:[%s836_s0 + $0x78] sm:$0xff]  ;;  %v689_v24 = vld [vmem:[%s838_s3] ss:$0 sm:$0xff] }
   0x9   :  { %509 = vmatpush3.bf16.msk.msra.mxu0 %vm505_vm3, %v504_v6  ;;  %513 = vmatpush3.bf16.msk.msra.mxu1 %vm505_vm3, %v504_v6 }
   0xc   :  { %477 = vmatmul.mubr.msk.f32.vlgmr.msra.gmra.mrb[0].mxu0 %vm37_vm1, %v18_v8  ;;  %489 = vmatmul.mubr.msk.f32.vlgmr.msra.gmra.mrb[0].mxu1 %vm37_vm1, %v26_v9 }
   0xd   :  { %479 = vmatprep.mubr.msk.f32.mxu0 %vm37_vm1, %v19_v10  ;;  %491 = vmatprep.mubr.msk.f32.mxu1 %vm37_vm1, %v27_v11 }
  0x10   :  { %480 = vmatmul.mubr.msk.f32.gmra.mrb[2].mxu0 %vm37_vm1, %v20_v12  ;;  %492 = vmatmul.mubr.msk.f32.gmra.mrb[2].mxu1 %vm37_vm1, %v28_v13 }
  0x11   :  { %482 = vmatprep.mubr.msk.f32.mxu0 %vm37_vm1, %v21_v14  ;;  %494 = vmatprep.mubr.msk.f32.mxu1 %vm37_vm1, %v29_v15 }
  0x14   :  { %483 = vmatmul.mubr.msk.f32.gmra.mrb[4].mxu0 %vm37_vm1, %v22_v16  ;;  %495 = vmatmul.mubr.msk.f32.gmra.mrb[4].mxu1 %vm37_vm1, %v30_v17 }
  0x15   :  { %485 = vmatprep.mubr.msk.f32.mxu0 %vm37_vm1, %v23_v18  ;;  %497 = vmatprep.mubr.msk.f32.mxu1 %vm37_vm1, %v31_v19 }
  0x18   :  { %486 = vmatmul.mubr.msk.f32.gmra.mrb[6].mxu0 %vm37_vm1, %v24_v20  ;;  %498 = vmatmul.mubr.msk.f32.gmra.mrb[6].mxu1 %vm37_vm1, %v32_v21 }
  0xdf   :  { %v478_v23 = vpop.f32.mrb[0].mxu0  ;;  %v490_v25 = vpop.f32.mrb[0].mxu1 }
  0xe0   :  { %v243_v26 = vmul.f32 %v478_v23, %v684_v22  ;;  %v251_v27 = vmul.f32 %v490_v25, %v684_v22  ;;  %v156_v28 = vpop.f32.mrb[1].mxu0  ;;  %v196_v29 = vpop.f32.mrb[1].mxu1 }
  0xe1   :  { %v242_v30 = vmul.f32 %v684_v22, %v156_v28  ;;  %v250_v31 = vmul.f32 %v684_v22, %v196_v29 }
  0xe2   :  { %v696_v32 = vadd.f32 %v689_v24, %v243_v26  ;;  %v699_v33 = vadd.f32 %v689_v24, %v251_v27 }
  0xe3   :  { %v702_v34 = vadd.f32 %v689_v24, %v242_v30  ;;  %v705_v35 = vadd.f32 %v689_v24, %v250_v31  ;;  %v481_v36 = vpop.f32.mrb[2].mxu0  ;;  %v493_v37 = vpop.f32.mrb[2].mxu1 }
  0xe4   :  { %v433_v38 = vmul.f32 -1.442695, %v696_v32  ;;  %v441_v39 = vmul.f32 -1.442695, %v699_v33  ;;  %v245_v40 = vmul.f32 %v481_v36, %v684_v22  ;;  %v253_v41 = vmul.f32 %v493_v37, %v684_v22  ;;  %v166_v42 = vpop.f32.mrb[3].mxu0  ;;  %v206_v43 = vpop.f32.mrb[3].mxu1 }
  0xe5   :  { %v432_v44 = vmul.f32 -1.442695, %v702_v34  ;;  %v440_v45 = vmul.f32 -1.442695, %v705_v35  ;;  %v244_v46 = vmul.f32 %v684_v22, %v166_v42  ;;  %v252_v47 = vmul.f32 %v684_v22, %v206_v43 }
  0xe6   :  { %515 = vpow2.f32 %v433_v38  ;;  %v716_v48 = vadd.f32 %v689_v24, %v245_v40  ;;  %v719_v49 = vadd.f32 %v689_v24, %v253_v41 }
  0xe7   :  { %517 = vpow2.f32 %v441_v39  ;;  %v722_v50 = vadd.f32 %v689_v24, %v244_v46  ;;  %v725_v51 = vadd.f32 %v689_v24, %v252_v47  ;;  %v484_v52 = vpop.f32.mrb[4].mxu0  ;;  %v496_v53 = vpop.f32.mrb[4].mxu1 }
  0xe8   :  { %519 = vpow2.f32 %v432_v44  ;;  %v435_v54 = vmul.f32 -1.442695, %v716_v48  ;;  %v443_v55 = vmul.f32 -1.442695, %v719_v49  ;;  %v247_v56 = vmul.f32 %v484_v52, %v684_v22  ;;  %v176_v57 = vpop.f32.mrb[5].mxu0  ;;  %v216_v58 = vpop.f32.mrb[5].mxu1 }
  0xe9   :  { %521 = vpow2.f32 %v440_v45  ;;  %v434_v59 = vmul.f32 -1.442695, %v722_v50  ;;  %v442_v60 = vmul.f32 -1.442695, %v725_v51  ;;  %v255_v61 = vmul.f32 %v496_v53, %v684_v22 }
  0xea   :  { %523 = vpow2.f32 %v435_v54  ;;  %v734_v62 = vadd.f32 %v689_v24, %v247_v56  ;;  %v246_v63 = vmul.f32 %v684_v22, %v176_v57  ;;  %v254_v0 = vmul.f32 %v684_v22, %v216_v58 }
  0xeb   :  { %525 = vpow2.f32 %v443_v55  ;;  %v739_v1 = vadd.f32 %v689_v24, %v255_v61  ;;  %v487_v2 = vpop.f32.mrb[6].mxu0  ;;  %v499_v3 = vpop.f32.mrb[6].mxu1 }
  0xec   :  { %527 = vpow2.f32 %v434_v59  ;;  %v437_v4 = vmul.f32 -1.442695, %v734_v62  ;;  %v743_v5 = vadd.f32 %v689_v24, %v246_v63  ;;  %v746_v6 = vadd.f32 %v689_v24, %v254_v0  ;;  %v186_v7 = vpop.f32.mrb[7].mxu0  ;;  %v226_v8 = vpop.f32.mrb[7].mxu1 }
  0xed   :  { %529 = vpow2.f32 %v442_v60  ;;  %v445_v9 = vmul.f32 -1.442695, %v739_v1  ;;  %v249_v19 = vmul.f32 %v487_v2, %v684_v22  ;;  %v257_v23 = vmul.f32 %v499_v3, %v684_v22 }
  0xee   :  { %531 = vpow2.f32 %v437_v4  ;;  %v436_v10 = vmul.f32 -1.442695, %v743_v5  ;;  %v444_v11 = vmul.f32 -1.442695, %v746_v6  ;;  %v248_v27 = vmul.f32 %v684_v22, %v186_v7 }
  0xef   :  { %533 = vpow2.f32 %v445_v9  ;;  %v256_v30 = vmul.f32 %v684_v22, %v226_v8  ;;  %v756_v37 = vadd.f32 %v689_v24, %v249_v19  ;;  %v759_v40 = vadd.f32 %v689_v24, %v257_v23 }
  0xf0   :  { %v516_v12 = vpop.eup %515  ;;  %535 = vpow2.f32 %v436_v10  ;;  %v762_v43 = vadd.f32 %v689_v24, %v248_v27 }
  0xf1   :  { %v518_v13 = vpop.eup %517  ;;  %v330_v14 = vadd.f32 1.0, %v516_v12  ;;  %537 = vpow2.f32 %v444_v11  ;;  %v765_v45 = vadd.f32 %v689_v24, %v256_v30  ;;  %v439_v52 = vmul.f32 -1.442695, %v756_v37 }
  0xf2   :  { %v520_v15 = vpop.eup %519  ;;  %v338_v16 = vadd.f32 1.0, %v518_v13  ;;  %v447_v54 = vmul.f32 -1.442695, %v759_v40  ;;  %v438_v56 = vmul.f32 -1.442695, %v762_v43 }
  0xf3   :  { %v522_v17 = vpop.eup %521  ;;  %539 = vrcp.f32 %v330_v14  ;;  %v329_v18 = vadd.f32 1.0, %v520_v15  ;;  %v446_v24 = vmul.f32 -1.442695, %v765_v45 }
  0xf4   :  { %v524_v20 = vpop.eup %523  ;;  %541 = vrcp.f32 %v338_v16  ;;  %v337_v21 = vadd.f32 1.0, %v522_v17 }
  0xf5   :  { %v526_v25 = vpop.eup %525  ;;  %543 = vrcp.f32 %v329_v18  ;;  %v332_v26 = vadd.f32 1.0, %v524_v20 }
  0xf6   :  { %v528_v28 = vpop.eup %527  ;;  %545 = vrcp.f32 %v337_v21  ;;  %v340_v29 = vadd.f32 1.0, %v526_v25 }
  0xf7   :  { %v530_v31 = vpop.eup %529  ;;  %547 = vrcp.f32 %v332_v26  ;;  %v331_v36 = vadd.f32 1.0, %v528_v28 }
  0xf8   :  { %v532_v38 = vpop.eup %531  ;;  %549 = vrcp.f32 %v340_v29  ;;  %v339_v39 = vadd.f32 1.0, %v530_v31 }
  0xf9   :  { %v534_v41 = vpop.eup %533  ;;  %551 = vrcp.f32 %v331_v36  ;;  %v334_v42 = vadd.f32 1.0, %v532_v38 }
  0xfa   :  { %v536_v44 = vpop.eup %535  ;;  %553 = vrcp.f32 %v339_v39  ;;  %v342_v22 = vadd.f32 1.0, %v534_v41 }
  0xfb   :  { %v538_v46 = vpop.eup %537  ;;  %555 = vrcp.f32 %v334_v42  ;;  %v333_v47 = vadd.f32 1.0, %v536_v44 }
  0xfc   :  { %557 = vrcp.f32 %v342_v22  ;;  %v341_v53 = vadd.f32 1.0, %v538_v46 }
  0xfd   :  { %v540_v55 = vpop.eup %539  ;;  %559 = vrcp.f32 %v333_v47 }
  0xfe   :  { %v542_v57 = vpop.eup %541  ;;  %v378_v58 = vmul.f32 %v540_v55, %v696_v32  ;;  %561 = vrcp.f32 %v341_v53 }
  0xff   :  { %v544_v59 = vpop.eup %543  ;;  %v386_v60 = vmul.f32 %v542_v57, %v699_v33  ;;  %563 = vpow2.f32 %v439_v52 }
 0x100   :  { %v546_v61 = vpop.eup %545  ;;  %394 = vst [vmem:[%s839_s4 + $0x8] sm:$0xff] %v378_v58  ;;  %v377_v63 = vmul.f32 %v544_v59, %v702_v34  ;;  %565 = vpow2.f32 %v447_v54 }
 0x101   :  { %v548_v0 = vpop.eup %547  ;;  %402 = vst [vmem:[%s839_s4 + $0x48] sm:$0xff] %v386_v60  ;;  %v385_v32 = vmul.f32 %v546_v61, %v705_v35  ;;  %567 = vpow2.f32 %v438_v56 }
 0x102   :  { %v550_v2 = vpop.eup %549  ;;  %393 = vst [vmem:[%s839_s4] sm:$0xff] %v377_v63  ;;  %v380_v33 = vmul.f32 %v548_v0, %v716_v48  ;;  %569 = vpow2.f32 %v446_v24 }
 0x103   :  { %v552_v3 = vpop.eup %551  ;;  %401 = vst [vmem:[%s839_s4 + $0x40] sm:$0xff] %v385_v32  ;;  %v388_v34 = vmul.f32 %v550_v2, %v719_v49 }
 0x104   :  { %v554_v4 = vpop.eup %553  ;;  %396 = vst [vmem:[%s839_s4 + $0x18] sm:$0xff] %v380_v33  ;;  %v379_v35 = vmul.f32 %v552_v3, %v722_v50 }
 0x105   :  { %v556_v7 = vpop.eup %555  ;;  %404 = vst [vmem:[%s839_s4 + $0x58] sm:$0xff] %v388_v34  ;;  %v387_v48 = vmul.f32 %v554_v4, %v725_v51 }
 0x106   :  { %v558_v8 = vpop.eup %557  ;;  %395 = vst [vmem:[%s839_s4 + $0x10] sm:$0xff] %v379_v35  ;;  %v382_v49 = vmul.f32 %v556_v7, %v734_v62 }
 0x107   :  { %v560_v9 = vpop.eup %559  ;;  %403 = vst [vmem:[%s839_s4 + $0x50] sm:$0xff] %v387_v48  ;;  %v390_v50 = vmul.f32 %v558_v8, %v739_v1 }
 0x108   :  { %v562_v10 = vpop.eup %561  ;;  %398 = vst [vmem:[%s839_s4 + $0x28] sm:$0xff] %v382_v49  ;;  %v381_v51 = vmul.f32 %v560_v9, %v743_v5 }
 0x109   :  { %v564_v11 = vpop.eup %563  ;;  %406 = vst [vmem:[%s839_s4 + $0x68] sm:$0xff] %v390_v50  ;;  %v389_v62 = vmul.f32 %v562_v10, %v746_v6 }
 0x10a   :  { %v566_v12 = vpop.eup %565  ;;  %397 = vst [vmem:[%s839_s4 + $0x20] sm:$0xff] %v381_v51  ;;  %v336_v1 = vadd.f32 1.0, %v564_v11 }
 0x10b   :  { %v568_v13 = vpop.eup %567  ;;  %405 = vst [vmem:[%s839_s4 + $0x60] sm:$0xff] %v389_v62  ;;  %v344_v14 = vadd.f32 1.0, %v566_v12 }
 0x10c   :  { %v570_v5 = vpop.eup %569  ;;  %571 = vrcp.f32 %v336_v1  ;;  %v335_v15 = vadd.f32 1.0, %v568_v13 }
 0x10d   :  { %573 = vrcp.f32 %v344_v14  ;;  %v343_v16 = vadd.f32 1.0, %v570_v5 }
 0x10e   :  { %575 = vrcp.f32 %v335_v15 }
 0x10f   :  { %577 = vrcp.f32 %v343_v16 }
 0x116   :  { %v572_v6 = vpop.eup %571 }
 0x117   :  { %v574_v17 = vpop.eup %573  ;;  %v384_v18 = vmul.f32 %v572_v6, %v756_v37 }
 0x118   :  { %v576_v19 = vpop.eup %575  ;;  %v392_v20 = vmul.f32 %v574_v17, %v759_v40 }
 0x119   :  { %v578_v21 = vpop.eup %577  ;;  %400 = vst [vmem:[%s839_s4 + $0x38] sm:$0xff] %v384_v18  ;;  %v383_v23 = vmul.f32 %v576_v19, %v762_v43 }
 0x11a   :  { %408 = vst [vmem:[%s839_s4 + $0x78] sm:$0xff] %v392_v20  ;;  %v391_v25 = vmul.f32 %v578_v21, %v765_v45 }
 0x11b   :  { %399 = vst [vmem:[%s839_s4 + $0x30] sm:$0xff] %v383_v23 }
 0x11c   :  { %407 = vst [vmem:[%s839_s4 + $0x70] sm:$0xff] %v391_v25 }

// kernel: isic_model_forward.3
= control target key start
LH: loop header
LB: loop body
LE: loop exit
PB: predicated region body
PF: predicated region fallthrough
CT: control target
= control target key end

     0   :  { %s4496_s0 = inlined_call_operand.vmem [shape: f32[2,64,1152], index: 0, kind: input, shape index: {}]   ;;  %s4497_s1 = inlined_call_operand.vmem [shape: f32[1152,128], index: 1, kind: input, shape index: {}]   ;;  %s4498_s2 = inlined_call_operand.vmem [shape: f32[1,128], index: 2, kind: input, shape index: {}]   ;;  %s4499_s3 = inlined_call_operand.vmem [shape: f32[1,128], index: 3, kind: input, shape index: {}]   ;;  %s4500_s4 = inlined_call_operand.vmem [shape: f32[128,128], index: 4, kind: input, shape index: {}]   ;;  %s4501_s5 = inlined_call_operand.vmem [shape: f32[1,128], index: 5, kind: input, shape index: {}]   ;;  %s4502_s6 = inlined_call_operand.vmem [shape: f32[1,128], index: 6, kind: input, shape index: {}]   ;;  %s4503_s7 = inlined_call_operand.vmem [shape: f32[128,128], index: 7, kind: input, shape index: {}]   ;;  %s4504_s8 = inlined_call_operand.vmem [shape: f32[1,128], index: 8, kind: input, shape index: {}]   ;;  %s4505_s9 = inlined_call_operand.vmem [shape: f32[1,128], index: 9, kind: input, shape index: {}]   ;;  %s4506_s10 = inlined_call_operand.vmem [shape: f32[128,128], index: 10, kind: input, shape index: {}]   ;;  %s4507_s11 = inlined_call_operand.vmem [shape: f32[1,128], index: 11, kind: input, shape index: {}]   ;;  %s4508_s12 = inlined_call_operand.hbm [shape: f32[2,128], index: 12, kind: output, shape index: {}]  }
   0x1   :  { %v207_v0 = vld [vmem:[%s4497_s1 + $0x80] sm:$0xff]  ;;  %v208_v1 = vld [vmem:[%s4497_s1 + $0x88] sm:$0xff]  ;;  %v209_v11 = vld [vmem:[%s4497_s1 + $0x90] sm:$0xff] }
   0x2   :  { %v239_v2 = vld [vmem:[%s4497_s1 + $0x180] sm:$0xff]  ;;  %v2582_v3 = vpack.c.bf16 %v208_v1, %v207_v0  ;;  %v240_v4 = vld [vmem:[%s4497_s1 + $0x188] sm:$0xff]  ;;  %v210_v13 = vld [vmem:[%s4497_s1 + $0x98] sm:$0xff] }
   0x3   :  { %v191_v5 = vld [vmem:[%s4497_s1] sm:$0xff]  ;;  %v192_v6 = vld [vmem:[%s4497_s1 + $0x8] sm:$0xff]  ;;  %v2614_v7 = vpack.c.bf16 %v240_v4, %v239_v2  ;;  %v241_v14 = vld [vmem:[%s4497_s1 + $0x190] sm:$0xff]  ;;  %v2586_v16 = vpack.c.bf16 %v210_v13, %v209_v11 }
   0x4   :  { %v2584_v8 = vpack.c.bf16 %v192_v6, %v191_v5  ;;  %v223_v9 = vld [vmem:[%s4497_s1 + $0x100] sm:$0xff]  ;;  %v224_v10 = vld [vmem:[%s4497_s1 + $0x108] sm:$0xff]  ;;  %2583 = vmatprep.subr.bf16.mxu0 %v2582_v3  ;;  %v242_v15 = vld [vmem:[%s4497_s1 + $0x198] sm:$0xff] }
   0x5   :  { %v2616_v12 = vpack.c.bf16 %v224_v10, %v223_v9  ;;  %2615 = vmatprep.subr.bf16.mxu1 %v2614_v7  ;;  %v2618_v17 = vpack.c.bf16 %v242_v15, %v241_v14  ;;  %v193_v18 = vld [vmem:[%s4497_s1 + $0x10] sm:$0xff]  ;;  %v194_v19 = vld [vmem:[%s4497_s1 + $0x18] sm:$0xff]  ;;  %v211_v23 = vld [vmem:[%s4497_s1 + $0xa0] sm:$0xff] }
   0x6   :  { %2585 = vmatpush3.bf16.msra.mxu0 %v2584_v8  ;;  %v225_v20 = vld [vmem:[%s4497_s1 + $0x110] sm:$0xff]  ;;  %v2588_v21 = vpack.c.bf16 %v194_v19, %v193_v18  ;;  %v226_v22 = vld [vmem:[%s4497_s1 + $0x118] sm:$0xff]  ;;  %v212_v24 = vld [vmem:[%s4497_s1 + $0xa8] sm:$0xff] }
   0x7   :  { %2617 = vmatpush3.bf16.msra.mxu1 %v2616_v12  ;;  %2587 = vmatprep.subr.bf16.mxu0 %v2586_v16  ;;  %v2620_v25 = vpack.c.bf16 %v226_v22, %v225_v20  ;;  %v2590_v26 = vpack.c.bf16 %v212_v24, %v211_v23  ;;  %v243_v27 = vld [vmem:[%s4497_s1 + $0x1a0] sm:$0xff]  ;;  %v244_v28 = vld [vmem:[%s4497_s1 + $0x1a8] sm:$0xff]  ;;  %v213_v35 = vld [vmem:[%s4497_s1 + $0xb0] sm:$0xff] }
   0x8   :  { %2619 = vmatprep.subr.bf16.mxu1 %v2618_v17  ;;  %v195_v29 = vld [vmem:[%s4497_s1 + $0x20] sm:$0xff]  ;;  %v2622_v30 = vpack.c.bf16 %v244_v28, %v243_v27  ;;  %v196_v31 = vld [vmem:[%s4497_s1 + $0x28] sm:$0xff]  ;;  %v214_v36 = vld [vmem:[%s4497_s1 + $0xb8] sm:$0xff] }
   0x9   :  { %v227_v32 = vld [vmem:[%s4497_s1 + $0x120] sm:$0xff]  ;;  %v228_v33 = vld [vmem:[%s4497_s1 + $0x128] sm:$0xff]  ;;  %v2592_v34 = vpack.c.bf16 %v196_v31, %v195_v29  ;;  %v245_v37 = vld [vmem:[%s4497_s1 + $0x1b0] sm:$0xff]  ;;  %v2594_v39 = vpack.c.bf16 %v214_v36, %v213_v35 }
   0xa   :  { %2589 = vmatpush3.bf16.msra.mxu0 %v2588_v21  ;;  %v2624_v38 = vpack.c.bf16 %v228_v33, %v227_v32  ;;  %v246_v40 = vld [vmem:[%s4497_s1 + $0x1b8] sm:$0xff]  ;;  %v197_v41 = vld [vmem:[%s4497_s1 + $0x30] sm:$0xff]  ;;  %v215_v46 = vld [vmem:[%s4497_s1 + $0xc0] sm:$0xff] }
   0xb   :  { %2621 = vmatpush3.bf16.msra.mxu1 %v2620_v25  ;;  %2591 = vmatprep.subr.bf16.mxu0 %v2590_v26  ;;  %v198_v42 = vld [vmem:[%s4497_s1 + $0x38] sm:$0xff]  ;;  %v2626_v43 = vpack.c.bf16 %v246_v40, %v245_v37  ;;  %v229_v44 = vld [vmem:[%s4497_s1 + $0x130] sm:$0xff]  ;;  %v216_v47 = vld [vmem:[%s4497_s1 + $0xc8] sm:$0xff] }
   0xc   :  { %2623 = vmatprep.subr.bf16.mxu1 %v2622_v30  ;;  %v230_v45 = vld [vmem:[%s4497_s1 + $0x138] sm:$0xff]  ;;  %v247_v48 = vld [vmem:[%s4497_s1 + $0x1c0] sm:$0xff]  ;;  %v248_v49 = vld [vmem:[%s4497_s1 + $0x1c8] sm:$0xff]  ;;  %v2596_v50 = vpack.c.bf16 %v198_v42, %v197_v41  ;;  %v2598_v52 = vpack.c.bf16 %v216_v47, %v215_v46 }
   0xd   :  { %v2628_v51 = vpack.c.bf16 %v230_v45, %v229_v44  ;;  %v199_v53 = vld [vmem:[%s4497_s1 + $0x40] sm:$0xff]  ;;  %v200_v54 = vld [vmem:[%s4497_s1 + $0x48] sm:$0xff]  ;;  %v2630_v56 = vpack.c.bf16 %v248_v49, %v247_v48  ;;  %v217_v58 = vld [vmem:[%s4497_s1 + $0xd0] sm:$0xff] }
   0xe   :  { %2593 = vmatpush3.bf16.msra.mxu0 %v2592_v34  ;;  %v231_v55 = vld [vmem:[%s4497_s1 + $0x140] sm:$0xff]  ;;  %v232_v57 = vld [vmem:[%s4497_s1 + $0x148] sm:$0xff]  ;;  %v218_v59 = vld [vmem:[%s4497_s1 + $0xd8] sm:$0xff]  ;;  %v2600_v62 = vpack.c.bf16 %v200_v54, %v199_v53 }
   0xf   :  { %2625 = vmatpush3.bf16.msra.mxu1 %v2624_v38  ;;  %2595 = vmatprep.subr.bf16.mxu0 %v2594_v39  ;;  %v249_v60 = vld [vmem:[%s4497_s1 + $0x1d0] sm:$0xff]  ;;  %v250_v61 = vld [vmem:[%s4497_s1 + $0x1d8] sm:$0xff]  ;;  %v2632_v63 = vpack.c.bf16 %v232_v57, %v231_v55  ;;  %v2602_v0 = vpack.c.bf16 %v218_v59, %v217_v58  ;;  %v219_v6 = vld [vmem:[%s4497_s1 + $0xe0] sm:$0xff] }
  0x10   :  { %2627 = vmatprep.subr.bf16.mxu1 %v2626_v43  ;;  %v201_v1 = vld [vmem:[%s4497_s1 + $0x50] sm:$0xff]  ;;  %v202_v2 = vld [vmem:[%s4497_s1 + $0x58] sm:$0xff]  ;;  %v2634_v4 = vpack.c.bf16 %v250_v61, %v249_v60  ;;  %v220_v7 = vld [vmem:[%s4497_s1 + $0xe8] sm:$0xff] }
  0x11   :  { %v233_v3 = vld [vmem:[%s4497_s1 + $0x150] sm:$0xff]  ;;  %v234_v5 = vld [vmem:[%s4497_s1 + $0x158] sm:$0xff]  ;;  %v251_v8 = vld [vmem:[%s4497_s1 + $0x1e0] sm:$0xff]  ;;  %v2604_v10 = vpack.c.bf16 %v202_v2, %v201_v1  ;;  %v2606_v14 = vpack.c.bf16 %v220_v7, %v219_v6 }
  0x12   :  { %2597 = vmatpush3.bf16.msra.mxu0 %v2596_v50  ;;  %v252_v9 = vld [vmem:[%s4497_s1 + $0x1e8] sm:$0xff]  ;;  %v203_v11 = vld [vmem:[%s4497_s1 + $0x60] sm:$0xff]  ;;  %v2636_v13 = vpack.c.bf16 %v234_v5, %v233_v3  ;;  %v50_v17 = vld [vmem:[%s4496_s0 + $0x18] sm:$0xff] }
  0x13   :  { %2629 = vmatpush3.bf16.msra.mxu1 %v2628_v51  ;;  %2599 = vmatprep.subr.bf16.mxu0 %v2598_v52  ;;  %v204_v12 = vld [vmem:[%s4497_s1 + $0x68] sm:$0xff]  ;;  %v235_v15 = vld [vmem:[%s4497_s1 + $0x160] sm:$0xff]  ;;  %v2638_v18 = vpack.c.bf16 %v252_v9, %v251_v8  ;;  %v221_v20 = vld [vmem:[%s4497_s1 + $0xf0] sm:$0xff] }
  0x14   :  { %2631 = vmatprep.subr.bf16.mxu1 %v2630_v56  ;;  %v48_v16 = vld [vmem:[%s4496_s0 + $0x8] sm:$0xff]  ;;  %v222_v21 = vld [vmem:[%s4497_s1 + $0xf8] sm:$0xff]  ;;  %v253_v22 = vld [vmem:[%s4497_s1 + $0x1f0] sm:$0xff]  ;;  %544 = vmatprep.mubr.f32.mxu1 %v50_v17  ;;  %v2608_v24 = vpack.c.bf16 %v204_v12, %v203_v11 }
  0x15   :  { %v236_v19 = vld [vmem:[%s4497_s1 + $0x168] sm:$0xff]  ;;  %399 = vmatprep.mubr.f32.mxu0 %v48_v16  ;;  %v254_v23 = vld [vmem:[%s4497_s1 + $0x1f8] sm:$0xff]  ;;  %v2610_v26 = vpack.c.bf16 %v222_v21, %v221_v20  ;;  %v205_v27 = vld [vmem:[%s4497_s1 + $0x70] sm:$0xff] }
  0x16   :  { %2601 = vmatpush3.bf16.msra.mxu0 %v2600_v62  ;;  %v2640_v25 = vpack.c.bf16 %v236_v19, %v235_v15  ;;  %v206_v28 = vld [vmem:[%s4497_s1 + $0x78] sm:$0xff]  ;;  %v237_v29 = vld [vmem:[%s4497_s1 + $0x170] sm:$0xff]  ;;  %v2642_v30 = vpack.c.bf16 %v254_v23, %v253_v22  ;;  %v271_v32 = vld [vmem:[%s4497_s1 + $0x280] sm:$0xff] }
  0x17   :  { %2633 = vmatpush3.bf16.msra.mxu1 %v2632_v63  ;;  %2603 = vmatprep.subr.bf16.mxu0 %v2602_v0  ;;  %v238_v31 = vld [vmem:[%s4497_s1 + $0x178] sm:$0xff]  ;;  %v272_v33 = vld [vmem:[%s4497_s1 + $0x288] sm:$0xff]  ;;  %v2612_v34 = vpack.c.bf16 %v206_v28, %v205_v27  ;;  %v255_v37 = vld [vmem:[%s4497_s1 + $0x200] sm:$0xff] }
  0x18   :  { %2635 = vmatprep.subr.bf16.mxu1 %v2634_v4  ;;  %v2644_v35 = vpack.c.bf16 %v238_v31, %v237_v29  ;;  %v2646_v36 = vpack.c.bf16 %v272_v33, %v271_v32  ;;  %v256_v38 = vld [vmem:[%s4497_s1 + $0x208] sm:$0xff]  ;;  %v273_v39 = vld [vmem:[%s4497_s1 + $0x290] sm:$0xff]  ;;  %v274_v40 = vld [vmem:[%s4497_s1 + $0x298] sm:$0xff] }
  0x19   :  { %v47_v41 = vld [vmem:[%s4496_s0] sm:$0xff]  ;;  %v2648_v42 = vpack.c.bf16 %v256_v38, %v255_v37  ;;  %v49_v43 = vld [vmem:[%s4496_s0 + $0x10] sm:$0xff]  ;;  %v2650_v46 = vpack.c.bf16 %v274_v40, %v273_v39  ;;  %v258_v48 = vld [vmem:[%s4497_s1 + $0x218] sm:$0xff] }
  0x1a   :  { %2605 = vmatpush3.bf16.msra.mxu0 %v2604_v10  ;;  %v57_v44 = vld [vmem:[%s4496_s0 + $0x50] sm:$0xff]  ;;  %v59_v45 = vld [vmem:[%s4496_s0 + $0x60] sm:$0xff]  ;;  %v56_v49 = vld [vmem:[%s4496_s0 + $0x48] sm:$0xff] }
  0x1b   :  { %2637 = vmatpush3.bf16.msra.mxu1 %v2636_v13  ;;  %2607 = vmatprep.subr.bf16.mxu0 %v2606_v14  ;;  %v257_v47 = vld [vmem:[%s4497_s1 + $0x210] sm:$0xff]  ;;  %v275_v50 = vld [vmem:[%s4497_s1 + $0x2a0] sm:$0xff]  ;;  %v276_v51 = vld [vmem:[%s4497_s1 + $0x2a8] sm:$0xff] }
  0x1c   :  { %2639 = vmatprep.subr.bf16.mxu1 %v2638_v18  ;;  %v58_v52 = vld [vmem:[%s4496_s0 + $0x58] sm:$0xff]  ;;  %v68_v54 = vld [vmem:[%s4496_s0 + $0xa8] sm:$0xff]  ;;  %v2652_v55 = vpack.c.bf16 %v258_v48, %v257_v47  ;;  %v259_v56 = vld [vmem:[%s4497_s1 + $0x220] sm:$0xff]  ;;  %v2654_v59 = vpack.c.bf16 %v276_v51, %v275_v50 }
  0x1d   :  { %v66_v53 = vld [vmem:[%s4496_s0 + $0x98] sm:$0xff]  ;;  %v303_v57 = vld [vmem:[%s4497_s1 + $0x380] sm:$0xff]  ;;  %v304_v58 = vld [vmem:[%s4497_s1 + $0x388] sm:$0xff] }
  0x1e   :  { %2609 = vmatpush3.bf16.msra.mxu0 %v2608_v24  ;;  %v260_v60 = vld [vmem:[%s4497_s1 + $0x228] sm:$0xff]  ;;  %v2678_v61 = vpack.c.bf16 %v304_v58, %v303_v57  ;;  %v287_v62 = vld [vmem:[%s4497_s1 + $0x300] sm:$0xff]  ;;  %v277_v0 = vld [vmem:[%s4497_s1 + $0x2b0] sm:$0xff] }
  0x1f   :  { %2641 = vmatpush3.bf16.msra.mxu1 %v2640_v25  ;;  %2611 = vmatprep.subr.bf16.mxu0 %v2610_v26  ;;  %v288_v63 = vld [vmem:[%s4497_s1 + $0x308] sm:$0xff]  ;;  %v278_v1 = vld [vmem:[%s4497_s1 + $0x2b8] sm:$0xff]  ;;  %v65_v3 = vld [vmem:[%s4496_s0 + $0x90] sm:$0xff]  ;;  %v2656_v7 = vpack.c.bf16 %v260_v60, %v259_v56 }
  0x20   :  { %2643 = vmatprep.subr.bf16.mxu1 %v2642_v30  ;;  %v2680_v2 = vpack.c.bf16 %v288_v63, %v287_v62  ;;  %v67_v4 = vld [vmem:[%s4496_s0 + $0xa0] sm:$0xff]  ;;  %v77_v6 = vld [vmem:[%s4496_s0 + $0xf0] sm:$0xff]  ;;  %v262_v9 = vld [vmem:[%s4497_s1 + $0x238] sm:$0xff]  ;;  %v2658_v10 = vpack.c.bf16 %v278_v1, %v277_v0 }
  0x21   :  { %v75_v5 = vld [vmem:[%s4496_s0 + $0xe0] sm:$0xff]  ;;  %v261_v8 = vld [vmem:[%s4497_s1 + $0x230] sm:$0xff]  ;;  %v280_v12 = vld [vmem:[%s4497_s1 + $0x2c8] sm:$0xff] }
  0x22   :  { %2613 = vmatpush3.bf16.msra.mxu0 %v2612_v34  ;;  %v279_v11 = vld [vmem:[%s4497_s1 + $0x2c0] sm:$0xff]  ;;  %v305_v13 = vld [vmem:[%s4497_s1 + $0x390] sm:$0xff]  ;;  %v306_v14 = vld [vmem:[%s4497_s1 + $0x398] sm:$0xff]  ;;  %v2660_v23 = vpack.c.bf16 %v262_v9, %v261_v8 }
  0x23   :  { %2645 = vmatpush3.bf16.msra.mxu1 %v2644_v35  ;;  %2647 = vmatprep.subr.bf16.mxu0 %v2646_v36  ;;  %v289_v15 = vld [vmem:[%s4497_s1 + $0x310] sm:$0xff]  ;;  %v290_v16 = vld [vmem:[%s4497_s1 + $0x318] sm:$0xff]  ;;  %v2682_v18 = vpack.c.bf16 %v306_v14, %v305_v13  ;;  %v76_v20 = vld [vmem:[%s4496_s0 + $0xe8] sm:$0xff]  ;;  %v2662_v25 = vpack.c.bf16 %v280_v12, %v279_v11 }
  0x24   :  { %2679 = vmatprep.subr.bf16.mxu1 %v2678_v61  ;;  %v74_v17 = vld [vmem:[%s4496_s0 + $0xd8] sm:$0xff]  ;;  %v2684_v19 = vpack.c.bf16 %v290_v16, %v289_v15  ;;  %v84_v21 = vld [vmem:[%s4496_s0 + $0x128] sm:$0xff]  ;;  %v83_v24 = vld [vmem:[%s4496_s0 + $0x120] sm:$0xff] }
  0x25   :  { %400 = vmatmul.mubr.f32.vlgmr.msra.gmra.mrb[0].mxu0 %v47_v41  ;;  %v86_v22 = vld [vmem:[%s4496_s0 + $0x138] sm:$0xff]  ;;  %v263_v26 = vld [vmem:[%s4497_s1 + $0x240] sm:$0xff]  ;;  %v264_v27 = vld [vmem:[%s4497_s1 + $0x248] sm:$0xff] }
  0x26   :  { %545 = vmatmul.mubr.f32.vlgmr.msra.gmra.mrb[0].mxu1 %v49_v43  ;;  %2649 = vmatpush3.bf16.msra.mxu0 %v2648_v42  ;;  %v307_v28 = vld [vmem:[%s4497_s1 + $0x3a0] sm:$0xff]  ;;  %v85_v29 = vld [vmem:[%s4496_s0 + $0x130] sm:$0xff]  ;;  %v282_v31 = vld [vmem:[%s4497_s1 + $0x2d8] sm:$0xff]  ;;  %v2664_v38 = vpack.c.bf16 %v264_v27, %v263_v26 }
  0x27   :  { %404 = vmatprep.mubr.f32.mxu0 %v57_v44  ;;  %549 = vmatprep.mubr.f32.mxu1 %v59_v45  ;;  %v281_v30 = vld [vmem:[%s4497_s1 + $0x2d0] sm:$0xff]  ;;  %v308_v32 = vld [vmem:[%s4497_s1 + $0x3a8] sm:$0xff]  ;;  %v291_v35 = vld [vmem:[%s4497_s1 + $0x320] sm:$0xff] }
  0x28   :  { %2651 = vmatprep.subr.bf16.mxu0 %v2650_v46  ;;  %2681 = vmatpush3.bf16.msra.mxu1 %v2680_v2  ;;  %v93_v33 = vld [vmem:[%s4496_s0 + $0x170] sm:$0xff]  ;;  %v2686_v34 = vpack.c.bf16 %v308_v32, %v307_v28  ;;  %v292_v36 = vld [vmem:[%s4497_s1 + $0x328] sm:$0xff]  ;;  %v95_v37 = vld [vmem:[%s4496_s0 + $0x180] sm:$0xff]  ;;  %v2666_v42 = vpack.c.bf16 %v282_v31, %v281_v30 }
  0x29   :  { %405 = vmatmul.mubr.f32.gmra.mrb[2].mxu0 %v56_v49  ;;  %2683 = vmatprep.subr.bf16.mxu1 %v2682_v18  ;;  %v2688_v39 = vpack.c.bf16 %v292_v36, %v291_v35  ;;  %v309_v40 = vld [vmem:[%s4497_s1 + $0x3b0] sm:$0xff]  ;;  %v310_v41 = vld [vmem:[%s4497_s1 + $0x3b8] sm:$0xff]  ;;  %v92_v47 = vld [vmem:[%s4496_s0 + $0x168] sm:$0xff] }
  0x2a   :  { %550 = vmatmul.mubr.f32.gmra.mrb[2].mxu1 %v58_v52  ;;  %409 = vmatprep.mubr.f32.mxu0 %v66_v53  ;;  %v265_v43 = vld [vmem:[%s4497_s1 + $0x250] sm:$0xff]  ;;  %v266_v44 = vld [vmem:[%s4497_s1 + $0x258] sm:$0xff]  ;;  %v2690_v45 = vpack.c.bf16 %v310_v41, %v309_v40  ;;  %v283_v52 = vld [vmem:[%s4497_s1 + $0x2e0] sm:$0xff] }
  0x2b   :  { %554 = vmatprep.mubr.f32.mxu1 %v68_v54  ;;  %2653 = vmatpush3.bf16.msra.mxu0 %v2652_v55  ;;  %v293_v46 = vld [vmem:[%s4497_s1 + $0x330] sm:$0xff]  ;;  %v94_v48 = vld [vmem:[%s4496_s0 + $0x178] sm:$0xff]  ;;  %v284_v53 = vld [vmem:[%s4497_s1 + $0x2e8] sm:$0xff]  ;;  %v2668_v55 = vpack.c.bf16 %v266_v44, %v265_v43 }
  0x2c   :  { %2655 = vmatprep.subr.bf16.mxu0 %v2654_v59  ;;  %2685 = vmatpush3.bf16.msra.mxu1 %v2684_v19  ;;  %v294_v49 = vld [vmem:[%s4497_s1 + $0x338] sm:$0xff]  ;;  %v104_v54 = vld [vmem:[%s4496_s0 + $0x1c8] sm:$0xff]  ;;  %v311_v56 = vld [vmem:[%s4497_s1 + $0x3c0] sm:$0xff]  ;;  %v2670_v58 = vpack.c.bf16 %v284_v53, %v283_v52 }
  0x2d   :  { %410 = vmatmul.mubr.f32.gmra.mrb[4].mxu0 %v65_v3  ;;  %2687 = vmatprep.subr.bf16.mxu1 %v2686_v34  ;;  %v102_v50 = vld [vmem:[%s4496_s0 + $0x1b8] sm:$0xff]  ;;  %v2692_v51 = vpack.c.bf16 %v294_v49, %v293_v46  ;;  %v312_v57 = vld [vmem:[%s4497_s1 + $0x3c8] sm:$0xff]  ;;  %v267_v59 = vld [vmem:[%s4497_s1 + $0x260] sm:$0xff] }
  0x2e   :  { %555 = vmatmul.mubr.f32.gmra.mrb[4].mxu1 %v67_v4  ;;  %414 = vmatprep.mubr.f32.mxu0 %v75_v5  ;;  %v268_v60 = vld [vmem:[%s4497_s1 + $0x268] sm:$0xff]  ;;  %v2694_v61 = vpack.c.bf16 %v312_v57, %v311_v56  ;;  %v295_v62 = vld [vmem:[%s4497_s1 + $0x340] sm:$0xff]  ;;  %v101_v63 = vld [vmem:[%s4496_s0 + $0x1b0] sm:$0xff] }
  0x2f   :  { %559 = vmatprep.mubr.f32.mxu1 %v77_v6  ;;  %2657 = vmatpush3.bf16.msra.mxu0 %v2656_v7  ;;  %v296_v0 = vld [vmem:[%s4497_s1 + $0x348] sm:$0xff]  ;;  %v103_v1 = vld [vmem:[%s4496_s0 + $0x1c0] sm:$0xff]  ;;  %v313_v3 = vld [vmem:[%s4497_s1 + $0x3d0] sm:$0xff]  ;;  %v2672_v6 = vpack.c.bf16 %v268_v60, %v267_v59 }
  0x30   :  { %2659 = vmatprep.subr.bf16.mxu0 %v2658_v10  ;;  %2689 = vmatpush3.bf16.msra.mxu1 %v2688_v39  ;;  %v2696_v2 = vpack.c.bf16 %v296_v0, %v295_v62  ;;  %v314_v4 = vld [vmem:[%s4497_s1 + $0x3d8] sm:$0xff]  ;;  %v111_v5 = vld [vmem:[%s4496_s0 + $0x200] sm:$0xff]  ;;  %v297_v7 = vld [vmem:[%s4497_s1 + $0x350] sm:$0xff] }
  0x31   :  { %415 = vmatmul.mubr.f32.gmra.mrb[6].mxu0 %v74_v17  ;;  %2691 = vmatprep.subr.bf16.mxu1 %v2690_v45  ;;  %v298_v8 = vld [vmem:[%s4497_s1 + $0x358] sm:$0xff]  ;;  %v113_v9 = vld [vmem:[%s4496_s0 + $0x210] sm:$0xff]  ;;  %v2698_v11 = vpack.c.bf16 %v314_v4, %v313_v3  ;;  %v112_v17 = vld [vmem:[%s4496_s0 + $0x208] sm:$0xff] }
  0x32   :  { %560 = vmatmul.mubr.f32.gmra.mrb[6].mxu1 %v76_v20  ;;  %419 = vmatprep.mubr.f32.mxu0 %v84_v21  ;;  %v110_v10 = vld [vmem:[%s4496_s0 + $0x1f8] sm:$0xff]  ;;  %v285_v12 = vld [vmem:[%s4497_s1 + $0x2f0] sm:$0xff]  ;;  %v2700_v13 = vpack.c.bf16 %v298_v8, %v297_v7  ;;  %v315_v19 = vld [vmem:[%s4497_s1 + $0x3e0] sm:$0xff] }
  0x33   :  { %564 = vmatprep.mubr.f32.mxu1 %v86_v22  ;;  %2661 = vmatpush3.bf16.msra.mxu0 %v2660_v23  ;;  %v286_v14 = vld [vmem:[%s4497_s1 + $0x2f8] sm:$0xff]  ;;  %v269_v15 = vld [vmem:[%s4497_s1 + $0x270] sm:$0xff]  ;;  %v316_v20 = vld [vmem:[%s4497_s1 + $0x3e8] sm:$0xff] }
  0x34   :  { %2663 = vmatprep.subr.bf16.mxu0 %v2662_v25  ;;  %2693 = vmatpush3.bf16.msra.mxu1 %v2692_v51  ;;  %v270_v16 = vld [vmem:[%s4497_s1 + $0x278] sm:$0xff]  ;;  %v2674_v18 = vpack.c.bf16 %v286_v14, %v285_v12  ;;  %v120_v21 = vld [vmem:[%s4496_s0 + $0x248] sm:$0xff]  ;;  %v299_v23 = vld [vmem:[%s4497_s1 + $0x360] sm:$0xff]  ;;  %v2702_v26 = vpack.c.bf16 %v316_v20, %v315_v19 }
  0x35   :  { %420 = vmatmul.mubr.f32.gmra.mrb[8].mxu0 %v83_v24  ;;  %2695 = vmatprep.subr.bf16.mxu1 %v2694_v61  ;;  %v2676_v22 = vpack.c.bf16 %v270_v16, %v269_v15  ;;  %v300_v24 = vld [vmem:[%s4497_s1 + $0x368] sm:$0xff]  ;;  %v122_v25 = vld [vmem:[%s4496_s0 + $0x258] sm:$0xff]  ;;  %v317_v27 = vld [vmem:[%s4497_s1 + $0x3f0] sm:$0xff] }
  0x36   :  { %565 = vmatmul.mubr.f32.gmra.mrb[8].mxu1 %v85_v29  ;;  %424 = vmatprep.mubr.f32.mxu0 %v93_v33  ;;  %v119_v28 = vld [vmem:[%s4496_s0 + $0x240] sm:$0xff]  ;;  %v2704_v29 = vpack.c.bf16 %v300_v24, %v299_v23  ;;  %v318_v30 = vld [vmem:[%s4497_s1 + $0x3f8] sm:$0xff]  ;;  %v301_v31 = vld [vmem:[%s4497_s1 + $0x370] sm:$0xff] }
  0x37   :  { %569 = vmatprep.mubr.f32.mxu1 %v95_v37  ;;  %2665 = vmatpush3.bf16.msra.mxu0 %v2664_v38  ;;  %v302_v32 = vld [vmem:[%s4497_s1 + $0x378] sm:$0xff]  ;;  %v319_v33 = vld [vmem:[%s4497_s1 + $0x400] sm:$0xff]  ;;  %v121_v34 = vld [vmem:[%s4496_s0 + $0x250] sm:$0xff]  ;;  %v2706_v36 = vpack.c.bf16 %v318_v30, %v317_v27 }
  0x38   :  { %2667 = vmatprep.subr.bf16.mxu0 %v2666_v42  ;;  %2697 = vmatpush3.bf16.msra.mxu1 %v2696_v2  ;;  %v129_v35 = vld [vmem:[%s4496_s0 + $0x290] sm:$0xff]  ;;  %v320_v37 = vld [vmem:[%s4497_s1 + $0x408] sm:$0xff]  ;;  %v131_v38 = vld [vmem:[%s4496_s0 + $0x2a0] sm:$0xff]  ;;  %v2708_v40 = vpack.c.bf16 %v302_v32, %v301_v31 }
  0x39   :  { %425 = vmatmul.mubr.f32.gmra.mrb[10].mxu0 %v92_v47  ;;  %2699 = vmatprep.subr.bf16.mxu1 %v2698_v11  ;;  %v3575_v39 = vpack.c.bf16 %v320_v37, %v319_v33  ;;  %v128_v41 = vld [vmem:[%s4496_s0 + $0x288] sm:$0xff]  ;;  %v130_v42 = vld [vmem:[%s4496_s0 + $0x298] sm:$0xff]  ;;  %v137_v45 = vld [vmem:[%s4496_s0 + $0x2d0] sm:$0xff] }
  0x3a   :  { %570 = vmatmul.mubr.f32.gmra.mrb[10].mxu1 %v94_v48  ;;  %429 = vmatprep.mubr.f32.mxu0 %v102_v50  ;;  %v138_v43 = vld [vmem:[%s4496_s0 + $0x2d8] sm:$0xff]  ;;  %v140_v44 = vld [vmem:[%s4496_s0 + $0x2e8] sm:$0xff]  ;;  %v139_v46 = vld [vmem:[%s4496_s0 + $0x2e0] sm:$0xff] }
  0x3b   :  { %574 = vmatprep.mubr.f32.mxu1 %v104_v54  ;;  %2669 = vmatpush3.bf16.msra.mxu0 %v2668_v55  ;;  %v147_v47 = vld [vmem:[%s4496_s0 + $0x320] sm:$0xff]  ;;  %v149_v48 = vld [vmem:[%s4496_s0 + $0x330] sm:$0xff]  ;;  %v146_v49 = vld [vmem:[%s4496_s0 + $0x318] sm:$0xff] }
  0x3c   :  { %2671 = vmatprep.subr.bf16.mxu0 %v2670_v58  ;;  %2701 = vmatpush3.bf16.msra.mxu1 %v2700_v13  ;;  %v148_v50 = vld [vmem:[%s4496_s0 + $0x328] sm:$0xff]  ;;  %v158_v52 = vld [vmem:[%s4496_s0 + $0x378] sm:$0xff]  ;;  %v155_v53 = vld [vmem:[%s4496_s0 + $0x360] sm:$0xff] }
  0x3d   :  { %430 = vmatmul.mubr.f32.gmra.mrb[12].mxu0 %v101_v63  ;;  %2703 = vmatprep.subr.bf16.mxu1 %v2702_v26  ;;  %v156_v51 = vld [vmem:[%s4496_s0 + $0x368] sm:$0xff]  ;;  %v157_v54 = vld [vmem:[%s4496_s0 + $0x370] sm:$0xff]  ;;  %v167_v56 = vld [vmem:[%s4496_s0 + $0x3c0] sm:$0xff] }
  0x3e   :  { %575 = vmatmul.mubr.f32.gmra.mrb[12].mxu1 %v103_v1  ;;  %434 = vmatprep.mubr.f32.mxu0 %v111_v5  ;;  %v165_v55 = vld [vmem:[%s4496_s0 + $0x3b0] sm:$0xff]  ;;  %v164_v57 = vld [vmem:[%s4496_s0 + $0x3a8] sm:$0xff]  ;;  %v166_v58 = vld [vmem:[%s4496_s0 + $0x3b8] sm:$0xff] }
  0x3f   :  { %579 = vmatprep.mubr.f32.mxu1 %v113_v9  ;;  %2673 = vmatpush3.bf16.msra.mxu0 %v2672_v6  ;;  %v174_v59 = vld [vmem:[%s4496_s0 + $0x3f8] sm:$0xff]  ;;  %v176_v60 = vld [vmem:[%s4496_s0 + $0x408] sm:$0xff]  ;;  %v173_v61 = vld [vmem:[%s4496_s0 + $0x3f0] sm:$0xff] }
  0x40   :  { %2675 = vmatprep.subr.bf16.mxu0 %v2674_v18  ;;  %2705 = vmatpush3.bf16.msra.mxu1 %v2704_v29  ;;  %v175_v62 = vld [vmem:[%s4496_s0 + $0x400] sm:$0xff]  ;;  %v185_v0 = vld [vmem:[%s4496_s0 + $0x450] sm:$0xff]  ;;  %v182_v1 = vld [vmem:[%s4496_s0 + $0x438] sm:$0xff] }
  0x41   :  { %435 = vmatmul.mubr.f32.gmra.mrb[14].mxu0 %v110_v10  ;;  %2707 = vmatprep.subr.bf16.mxu1 %v2706_v36  ;;  %v183_v63 = vld [vmem:[%s4496_s0 + $0x440] sm:$0xff]  ;;  %v184_v2 = vld [vmem:[%s4496_s0 + $0x448] sm:$0xff]  ;;  %v54_v4 = vld [vmem:[%s4496_s0 + $0x38] sm:$0xff] }
  0x42   :  { %580 = vmatmul.mubr.f32.gmra.mrb[14].mxu1 %v112_v17  ;;  %439 = vmatprep.mubr.f32.mxu0 %v120_v21  ;;  %v52_v3 = vld [vmem:[%s4496_s0 + $0x28] sm:$0xff]  ;;  %v321_v5 = vld [vmem:[%s4497_s1 + $0x410] sm:$0xff]  ;;  %v322_v6 = vld [vmem:[%s4497_s1 + $0x418] sm:$0xff] }
  0x43   :  { %584 = vmatprep.mubr.f32.mxu1 %v122_v25  ;;  %2677 = vmatpush3.bf16.msra.mxu0 %v2676_v22  ;;  %v51_v7 = vld [vmem:[%s4496_s0 + $0x20] sm:$0xff] }
  0x44   :  { %2711 = vmatprep.subr.bf16.mxu0 %v3575_v39  ;;  %2709 = vmatpush3.bf16.msra.mxu1 %v2708_v40 }
  0x45   :  { %440 = vmatmul.mubr.f32.gmra.mrb[16].mxu0 %v119_v28 }
  0x46   :  { %585 = vmatmul.mubr.f32.gmra.mrb[16].mxu1 %v121_v34  ;;  %444 = vmatprep.mubr.f32.mxu0 %v129_v35 }
  0x47   :  { %589 = vmatprep.mubr.f32.mxu1 %v131_v38 }
  0x49   :  { %445 = vmatmul.mubr.f32.gmra.mrb[18].mxu0 %v128_v41 }
  0x4a   :  { %590 = vmatmul.mubr.f32.gmra.mrb[18].mxu1 %v130_v42  ;;  %449 = vmatprep.mubr.f32.mxu0 %v138_v43 }
  0x4b   :  { %594 = vmatprep.mubr.f32.mxu1 %v140_v44 }
  0x4d   :  { %450 = vmatmul.mubr.f32.gmra.mrb[20].mxu0 %v137_v45 }
  0x4e   :  { %595 = vmatmul.mubr.f32.gmra.mrb[20].mxu1 %v139_v46  ;;  %454 = vmatprep.mubr.f32.mxu0 %v147_v47 }
  0x4f   :  { %599 = vmatprep.mubr.f32.mxu1 %v149_v48 }
  0x51   :  { %455 = vmatmul.mubr.f32.gmra.mrb[22].mxu0 %v146_v49 }
  0x52   :  { %600 = vmatmul.mubr.f32.gmra.mrb[22].mxu1 %v148_v50  ;;  %459 = vmatprep.mubr.f32.mxu0 %v156_v51 }
  0x53   :  { %604 = vmatprep.mubr.f32.mxu1 %v158_v52 }
  0x55   :  { %460 = vmatmul.mubr.f32.gmra.mrb[24].mxu0 %v155_v53 }
  0x56   :  { %605 = vmatmul.mubr.f32.gmra.mrb[24].mxu1 %v157_v54  ;;  %464 = vmatprep.mubr.f32.mxu0 %v165_v55 }
  0x57   :  { %609 = vmatprep.mubr.f32.mxu1 %v167_v56 }
  0x59   :  { %465 = vmatmul.mubr.f32.gmra.mrb[26].mxu0 %v164_v57 }
  0x5a   :  { %610 = vmatmul.mubr.f32.gmra.mrb[26].mxu1 %v166_v58  ;;  %469 = vmatprep.mubr.f32.mxu0 %v174_v59 }
  0x5b   :  { %614 = vmatprep.mubr.f32.mxu1 %v176_v60 }
  0x5d   :  { %470 = vmatmul.mubr.f32.gmra.mrb[28].mxu0 %v173_v61 }
  0x5e   :  { %615 = vmatmul.mubr.f32.gmra.mrb[28].mxu1 %v175_v62  ;;  %474 = vmatprep.mubr.f32.mxu0 %v183_v63 }
  0x5f   :  { %619 = vmatprep.mubr.f32.mxu1 %v185_v0 }
  0x61   :  { %475 = vmatmul.mubr.f32.gmra.mrb[30].mxu0 %v182_v1 }
  0x62   :  { %620 = vmatmul.mubr.f32.gmra.mrb[30].mxu1 %v184_v2  ;;  %689 = vmatprep.mubr.f32.mxu0 %v52_v3 }
  0x63   :  { %17 = vsyncpa [#allocation4], 0  ;;  %834 = vmatprep.mubr.f32.mxu1 %v54_v4  ;;  %v53_v8 = vld [vmem:[%s4496_s0 + $0x30] sm:$0xff]  ;;  %v63_v10 = vld [vmem:[%s4496_s0 + $0x80] sm:$0xff]  ;;  %v2714_v11 = vpack.c.bf16 %v322_v6, %v321_v5  ;;  %vm3004_vm0 = vmmov 0   ;;  %vm1789_vm1 = vcmask 1041409  }
  0x64   :  { %v61_v9 = vld [vmem:[%s4496_s0 + $0x70] sm:$0xff]  ;;  %v323_v12 = vld [vmem:[%s4497_s1 + $0x420] sm:$0xff]  ;;  %v324_v13 = vld [vmem:[%s4497_s1 + $0x428] sm:$0xff] }
  0x65   :  { %690 = vmatmul.mubr.f32.vlgmr.msra.gmra.mrb[32].mxu0 %v51_v7  ;;  %v60_v14 = vld [vmem:[%s4496_s0 + $0x68] sm:$0xff]  ;;  %v62_v15 = vld [vmem:[%s4496_s0 + $0x78] sm:$0xff]  ;;  %v2718_v18 = vpack.c.bf16 %v324_v13, %v323_v12  ;;  %v325_v19 = vld [vmem:[%s4497_s1 + $0x430] sm:$0xff] }
  0x66   :  { %2713 = vmatpush3.bf16.msra.mxu0 %v3575_v39  ;;  %835 = vmatmul.mubr.f32.vlgmr.msra.gmra.mrb[32].mxu1 %v53_v8  ;;  %v70_v16 = vld [vmem:[%s4496_s0 + $0xb8] sm:$0xff]  ;;  %v72_v17 = vld [vmem:[%s4496_s0 + $0xc8] sm:$0xff]  ;;  %v69_v21 = vld [vmem:[%s4496_s0 + $0xb0] sm:$0xff] }
  0x67   :  { %694 = vmatprep.mubr.f32.mxu0 %v61_v9  ;;  %839 = vmatprep.mubr.f32.mxu1 %v63_v10  ;;  %v326_v20 = vld [vmem:[%s4497_s1 + $0x438] sm:$0xff]  ;;  %v71_v22 = vld [vmem:[%s4496_s0 + $0xc0] sm:$0xff]  ;;  %v81_v24 = vld [vmem:[%s4496_s0 + $0x110] sm:$0xff] }
  0x68   :  { %2715 = vmatprep.subr.bf16.mxu0 %v2714_v11  ;;  %v79_v23 = vld [vmem:[%s4496_s0 + $0x100] sm:$0xff]  ;;  %v2722_v25 = vpack.c.bf16 %v326_v20, %v325_v19  ;;  %v328_v27 = vld [vmem:[%s4497_s1 + $0x448] sm:$0xff]  ;;  %v78_v28 = vld [vmem:[%s4496_s0 + $0xf8] sm:$0xff] }
  0x69   :  { %695 = vmatmul.mubr.f32.gmra.mrb[34].mxu0 %v60_v14  ;;  %v327_v26 = vld [vmem:[%s4497_s1 + $0x440] sm:$0xff]  ;;  %v80_v29 = vld [vmem:[%s4496_s0 + $0x108] sm:$0xff]  ;;  %v90_v31 = vld [vmem:[%s4496_s0 + $0x158] sm:$0xff] }
  0x6a   :  { %840 = vmatmul.mubr.f32.gmra.mrb[34].mxu1 %v62_v15  ;;  %699 = vmatprep.mubr.f32.mxu0 %v70_v16  ;;  %v88_v30 = vld [vmem:[%s4496_s0 + $0x148] sm:$0xff]  ;;  %v2726_v32 = vpack.c.bf16 %v328_v27, %v327_v26  ;;  %v329_v33 = vld [vmem:[%s4497_s1 + $0x450] sm:$0xff]  ;;  %v330_v34 = vld [vmem:[%s4497_s1 + $0x458] sm:$0xff] }
  0x6b   :  { %844 = vmatprep.mubr.f32.mxu1 %v72_v17  ;;  %2717 = vmatpush3.bf16.msra.mxu0 %v2714_v11  ;;  %v87_v35 = vld [vmem:[%s4496_s0 + $0x140] sm:$0xff]  ;;  %v89_v36 = vld [vmem:[%s4496_s0 + $0x150] sm:$0xff]  ;;  %v2730_v39 = vpack.c.bf16 %v330_v34, %v329_v33  ;;  %v332_v41 = vld [vmem:[%s4497_s1 + $0x468] sm:$0xff] }
  0x6c   :  { %2719 = vmatprep.subr.bf16.mxu0 %v2718_v18  ;;  %v97_v37 = vld [vmem:[%s4496_s0 + $0x190] sm:$0xff]  ;;  %v99_v38 = vld [vmem:[%s4496_s0 + $0x1a0] sm:$0xff]  ;;  %v96_v42 = vld [vmem:[%s4496_s0 + $0x188] sm:$0xff] }
  0x6d   :  { %700 = vmatmul.mubr.f32.gmra.mrb[36].mxu0 %v69_v21  ;;  %v331_v40 = vld [vmem:[%s4497_s1 + $0x460] sm:$0xff]  ;;  %v98_v43 = vld [vmem:[%s4496_s0 + $0x198] sm:$0xff]  ;;  %v108_v45 = vld [vmem:[%s4496_s0 + $0x1e8] sm:$0xff] }
  0x6e   :  { %845 = vmatmul.mubr.f32.gmra.mrb[36].mxu1 %v71_v22  ;;  %704 = vmatprep.mubr.f32.mxu0 %v79_v23  ;;  %v106_v44 = vld [vmem:[%s4496_s0 + $0x1d8] sm:$0xff]  ;;  %v2734_v46 = vpack.c.bf16 %v332_v41, %v331_v40  ;;  %v333_v47 = vld [vmem:[%s4497_s1 + $0x470] sm:$0xff]  ;;  %v107_v50 = vld [vmem:[%s4496_s0 + $0x1e0] sm:$0xff] }
  0x6f   :  { %849 = vmatprep.mubr.f32.mxu1 %v81_v24  ;;  %2721 = vmatpush3.bf16.msra.mxu0 %v2718_v18  ;;  %v334_v48 = vld [vmem:[%s4497_s1 + $0x478] sm:$0xff]  ;;  %v105_v49 = vld [vmem:[%s4496_s0 + $0x1d0] sm:$0xff]  ;;  %v115_v51 = vld [vmem:[%s4496_s0 + $0x220] sm:$0xff] }
  0x70   :  { %2723 = vmatprep.subr.bf16.mxu0 %v2722_v25  ;;  %v117_v52 = vld [vmem:[%s4496_s0 + $0x230] sm:$0xff]  ;;  %v2738_v53 = vpack.c.bf16 %v334_v48, %v333_v47  ;;  %v114_v54 = vld [vmem:[%s4496_s0 + $0x218] sm:$0xff]  ;;  %v116_v55 = vld [vmem:[%s4496_s0 + $0x228] sm:$0xff] }
  0x71   :  { %705 = vmatmul.mubr.f32.gmra.mrb[38].mxu0 %v78_v28  ;;  %v124_v56 = vld [vmem:[%s4496_s0 + $0x268] sm:$0xff]  ;;  %v126_v57 = vld [vmem:[%s4496_s0 + $0x278] sm:$0xff]  ;;  %v123_v58 = vld [vmem:[%s4496_s0 + $0x260] sm:$0xff] }
  0x72   :  { %850 = vmatmul.mubr.f32.gmra.mrb[38].mxu1 %v80_v29  ;;  %709 = vmatprep.mubr.f32.mxu0 %v88_v30  ;;  %v125_v59 = vld [vmem:[%s4496_s0 + $0x270] sm:$0xff]  ;;  %v135_v61 = vld [vmem:[%s4496_s0 + $0x2c0] sm:$0xff]  ;;  %v132_v62 = vld [vmem:[%s4496_s0 + $0x2a8] sm:$0xff] }
  0x73   :  { %854 = vmatprep.mubr.f32.mxu1 %v90_v31  ;;  %2725 = vmatpush3.bf16.msra.mxu0 %v2722_v25  ;;  %v133_v60 = vld [vmem:[%s4496_s0 + $0x2b0] sm:$0xff]  ;;  %v134_v63 = vld [vmem:[%s4496_s0 + $0x2b8] sm:$0xff]  ;;  %v144_v1 = vld [vmem:[%s4496_s0 + $0x308] sm:$0xff] }
  0x74   :  { %2727 = vmatprep.subr.bf16.mxu0 %v2726_v32  ;;  %v142_v0 = vld [vmem:[%s4496_s0 + $0x2f8] sm:$0xff]  ;;  %v141_v2 = vld [vmem:[%s4496_s0 + $0x2f0] sm:$0xff]  ;;  %v143_v3 = vld [vmem:[%s4496_s0 + $0x300] sm:$0xff] }
  0x75   :  { %710 = vmatmul.mubr.f32.gmra.mrb[40].mxu0 %v87_v35  ;;  %v151_v4 = vld [vmem:[%s4496_s0 + $0x340] sm:$0xff]  ;;  %v153_v5 = vld [vmem:[%s4496_s0 + $0x350] sm:$0xff]  ;;  %v150_v6 = vld [vmem:[%s4496_s0 + $0x338] sm:$0xff] }
  0x76   :  { %855 = vmatmul.mubr.f32.gmra.mrb[40].mxu1 %v89_v36  ;;  %714 = vmatprep.mubr.f32.mxu0 %v97_v37  ;;  %v152_v7 = vld [vmem:[%s4496_s0 + $0x348] sm:$0xff]  ;;  %v162_v9 = vld [vmem:[%s4496_s0 + $0x398] sm:$0xff]  ;;  %v159_v10 = vld [vmem:[%s4496_s0 + $0x380] sm:$0xff] }
  0x77   :  { %859 = vmatprep.mubr.f32.mxu1 %v99_v38  ;;  %2729 = vmatpush3.bf16.msra.mxu0 %v2726_v32  ;;  %v160_v8 = vld [vmem:[%s4496_s0 + $0x388] sm:$0xff]  ;;  %v161_v11 = vld [vmem:[%s4496_s0 + $0x390] sm:$0xff]  ;;  %v171_v13 = vld [vmem:[%s4496_s0 + $0x3e0] sm:$0xff] }
  0x78   :  { %2731 = vmatprep.subr.bf16.mxu0 %v2730_v39  ;;  %v169_v12 = vld [vmem:[%s4496_s0 + $0x3d0] sm:$0xff]  ;;  %v168_v14 = vld [vmem:[%s4496_s0 + $0x3c8] sm:$0xff]  ;;  %v170_v15 = vld [vmem:[%s4496_s0 + $0x3d8] sm:$0xff] }
  0x79   :  { %715 = vmatmul.mubr.f32.gmra.mrb[42].mxu0 %v96_v42  ;;  %v178_v16 = vld [vmem:[%s4496_s0 + $0x418] sm:$0xff]  ;;  %v180_v17 = vld [vmem:[%s4496_s0 + $0x428] sm:$0xff]  ;;  %v177_v18 = vld [vmem:[%s4496_s0 + $0x410] sm:$0xff] }
  0x7a   :  { %860 = vmatmul.mubr.f32.gmra.mrb[42].mxu1 %v98_v43  ;;  %719 = vmatprep.mubr.f32.mxu0 %v106_v44  ;;  %v179_v19 = vld [vmem:[%s4496_s0 + $0x420] sm:$0xff]  ;;  %v189_v21 = vld [vmem:[%s4496_s0 + $0x470] sm:$0xff]  ;;  %v186_v22 = vld [vmem:[%s4496_s0 + $0x458] sm:$0xff] }
  0x7b   :  { %864 = vmatprep.mubr.f32.mxu1 %v108_v45  ;;  %2733 = vmatpush3.bf16.msra.mxu0 %v2730_v39  ;;  %v187_v20 = vld [vmem:[%s4496_s0 + $0x460] sm:$0xff]  ;;  %v188_v23 = vld [vmem:[%s4496_s0 + $0x468] sm:$0xff]  ;;  %v73_v26 = vld [vmem:[%s4496_s0 + $0xd0] sm:$0xff] }
  0x7c   :  { %2735 = vmatprep.subr.bf16.mxu0 %v2734_v46  ;;  %v55_v24 = vld [vmem:[%s4496_s0 + $0x40] sm:$0xff]  ;;  %v64_v25 = vld [vmem:[%s4496_s0 + $0x88] sm:$0xff]  ;;  %v82_v27 = vld [vmem:[%s4496_s0 + $0x118] sm:$0xff] }
  0x7d   :  { %720 = vmatmul.mubr.f32.gmra.mrb[44].mxu0 %v105_v49  ;;  %v91_v28 = vld [vmem:[%s4496_s0 + $0x160] sm:$0xff]  ;;  %v100_v29 = vld [vmem:[%s4496_s0 + $0x1a8] sm:$0xff]  ;;  %v109_v30 = vld [vmem:[%s4496_s0 + $0x1f0] sm:$0xff] }
  0x7e   :  { %865 = vmatmul.mubr.f32.gmra.mrb[44].mxu1 %v107_v50  ;;  %724 = vmatprep.mubr.f32.mxu0 %v115_v51  ;;  %v118_v31 = vld [vmem:[%s4496_s0 + $0x238] sm:$0xff]  ;;  %v127_v32 = vld [vmem:[%s4496_s0 + $0x280] sm:$0xff]  ;;  %v136_v33 = vld [vmem:[%s4496_s0 + $0x2c8] sm:$0xff] }
  0x7f   :  { %869 = vmatprep.mubr.f32.mxu1 %v117_v52  ;;  %2737 = vmatpush3.bf16.msra.mxu0 %v2734_v46  ;;  %v145_v34 = vld [vmem:[%s4496_s0 + $0x310] sm:$0xff]  ;;  %v154_v35 = vld [vmem:[%s4496_s0 + $0x358] sm:$0xff]  ;;  %v163_v36 = vld [vmem:[%s4496_s0 + $0x3a0] sm:$0xff] }
  0x80   :  { %2739 = vmatprep.subr.bf16.mxu0 %v2738_v53  ;;  %v172_v37 = vld [vmem:[%s4496_s0 + $0x3e8] sm:$0xff]  ;;  %v181_v38 = vld [vmem:[%s4496_s0 + $0x430] sm:$0xff]  ;;  %v190_v39 = vld [vmem:[%s4496_s0 + $0x478] sm:$0xff] }
  0x81   :  { %725 = vmatmul.mubr.f32.gmra.mrb[46].mxu0 %v114_v54  ;;  %v1218_v40 = vld [vmem:[%s4500_s4] sm:$0xff]  ;;  %v1219_v41 = vld [vmem:[%s4500_s4 + $0x8] sm:$0xff]  ;;  %v1220_v43 = vld [vmem:[%s4500_s4 + $0x10] sm:$0xff] }
  0x82   :  { %870 = vmatmul.mubr.f32.gmra.mrb[46].mxu1 %v116_v55  ;;  %729 = vmatprep.mubr.f32.mxu0 %v124_v56  ;;  %v2742_v42 = vpack.c.bf16 %v1219_v41, %v1218_v40  ;;  %v1221_v44 = vld [vmem:[%s4500_s4 + $0x18] sm:$0xff]  ;;  %v1222_v46 = vld [vmem:[%s4500_s4 + $0x20] sm:$0xff]  ;;  %v1223_v47 = vld [vmem:[%s4500_s4 + $0x28] sm:$0xff] }
  0x83   :  { %874 = vmatprep.mubr.f32.mxu1 %v126_v57  ;;  %2741 = vmatpush3.bf16.msra.mxu0 %v2738_v53  ;;  %v2746_v45 = vpack.c.bf16 %v1221_v44, %v1220_v43  ;;  %v2750_v48 = vpack.c.bf16 %v1223_v47, %v1222_v46  ;;  %v1224_v50 = vld [vmem:[%s4500_s4 + $0x30] sm:$0xff]  ;;  %v1225_v51 = vld [vmem:[%s4500_s4 + $0x38] sm:$0xff]  ;;  %v1230_v43 = vld [vmem:[%s4500_s4 + $0x60] sm:$0xff] }
  0x84   :  { %2743 = vmatprep.subr.bf16.mxu1 %v2742_v42  ;;  %v2754_v54 = vpack.c.bf16 %v1225_v51, %v1224_v50  ;;  %v1231_v44 = vld [vmem:[%s4500_s4 + $0x68] sm:$0xff] }
  0x85   :  { %730 = vmatmul.mubr.f32.gmra.mrb[48].mxu0 %v123_v58  ;;  %2745 = vmatpush3.bf16.msra.mxu1 %v2742_v42 }
  0x86   :  { %875 = vmatmul.mubr.f32.gmra.mrb[48].mxu1 %v125_v59  ;;  %734 = vmatprep.mubr.f32.mxu0 %v133_v60 }
  0x87   :  { %879 = vmatprep.mubr.f32.mxu1 %v135_v61  ;;  %2747 = vmatprep.subr.bf16.mxu1 %v2746_v45 }
  0x89   :  { %735 = vmatmul.mubr.f32.gmra.mrb[50].mxu0 %v132_v62  ;;  %2749 = vmatpush3.bf16.msra.mxu1 %v2746_v45 }
  0x8a   :  { %880 = vmatmul.mubr.f32.gmra.mrb[50].mxu1 %v134_v63  ;;  %739 = vmatprep.mubr.f32.mxu0 %v142_v0 }
  0x8b   :  { %884 = vmatprep.mubr.f32.mxu1 %v144_v1  ;;  %2751 = vmatprep.subr.bf16.mxu1 %v2750_v48 }
  0x8d   :  { %740 = vmatmul.mubr.f32.gmra.mrb[52].mxu0 %v141_v2  ;;  %2753 = vmatpush3.bf16.msra.mxu1 %v2750_v48  ;;  %v2766_v48 = vpack.c.bf16 %v1231_v44, %v1230_v43 }
  0x8e   :  { %885 = vmatmul.mubr.f32.gmra.mrb[52].mxu1 %v143_v3  ;;  %744 = vmatprep.mubr.f32.mxu0 %v151_v4 }
  0x8f   :  { %889 = vmatprep.mubr.f32.mxu1 %v153_v5  ;;  %2755 = vmatprep.subr.bf16.mxu1 %v2754_v54 }
  0x91   :  { %745 = vmatmul.mubr.f32.gmra.mrb[54].mxu0 %v150_v6  ;;  %2757 = vmatpush3.bf16.msra.mxu1 %v2754_v54  ;;  %v1233_v54 = vld [vmem:[%s4500_s4 + $0x78] sm:$0xff] }
  0x92   :  { %890 = vmatmul.mubr.f32.gmra.mrb[54].mxu1 %v152_v7  ;;  %749 = vmatprep.mubr.f32.mxu0 %v160_v8 }
  0x93   :  { %894 = vmatprep.mubr.f32.mxu1 %v162_v9 }
  0x95   :  { %750 = vmatmul.mubr.f32.gmra.mrb[56].mxu0 %v159_v10 }
  0x96   :  { %895 = vmatmul.mubr.f32.gmra.mrb[56].mxu1 %v161_v11  ;;  %754 = vmatprep.mubr.f32.mxu0 %v169_v12 }
  0x97   :  { %899 = vmatprep.mubr.f32.mxu1 %v171_v13 }
  0x99   :  { %755 = vmatmul.mubr.f32.gmra.mrb[58].mxu0 %v168_v14 }
  0x9a   :  { %900 = vmatmul.mubr.f32.gmra.mrb[58].mxu1 %v170_v15  ;;  %759 = vmatprep.mubr.f32.mxu0 %v178_v16 }
  0x9b   :  { %904 = vmatprep.mubr.f32.mxu1 %v180_v17 }
  0x9d   :  { %760 = vmatmul.mubr.f32.gmra.mrb[60].mxu0 %v177_v18 }
  0x9e   :  { %905 = vmatmul.mubr.f32.gmra.mrb[60].mxu1 %v179_v19  ;;  %764 = vmatprep.mubr.f32.mxu0 %v187_v20 }
  0x9f   :  { %909 = vmatprep.mubr.f32.mxu1 %v189_v21 }
  0xa1   :  { %765 = vmatmul.mubr.f32.gmra.mrb[62].mxu0 %v186_v22  ;;  %v1226_v22 = vld [vmem:[%s4500_s4 + $0x40] sm:$0xff] }
  0xa2   :  { %910 = vmatmul.mubr.f32.gmra.mrb[62].mxu1 %v188_v23  ;;  %2411 = vmatprep.mubr.f32.mxu0 %v55_v24  ;;  %v1227_v23 = vld [vmem:[%s4500_s4 + $0x48] sm:$0xff] }
  0xa5   :  { %2412 = vmatmul.mubr.f32.vlgmr.msra.gmra.mrb[64].mxu0 %v64_v25  ;;  %v2758_v25 = vpack.c.bf16 %v1227_v23, %v1226_v22 }
  0xa6   :  { %2414 = vmatprep.mubr.f32.mxu0 %v73_v26 }
  0xa7   :  { %2759 = vmatprep.subr.bf16.mxu1 %v2758_v25 }
  0xa8   :  { %2761 = vmatpush3.bf16.msra.mxu1 %v2758_v25 }
  0xa9   :  { %2415 = vmatmul.mubr.f32.gmra.mrb[66].mxu0 %v82_v27 }
  0xaa   :  { %2417 = vmatprep.mubr.f32.mxu0 %v91_v28 }
  0xad   :  { %2418 = vmatmul.mubr.f32.gmra.mrb[68].mxu0 %v100_v29 }
  0xae   :  { %2420 = vmatprep.mubr.f32.mxu0 %v109_v30 }
  0xb1   :  { %2421 = vmatmul.mubr.f32.gmra.mrb[70].mxu0 %v118_v31 }
  0xb2   :  { %2423 = vmatprep.mubr.f32.mxu0 %v127_v32 }
  0xb5   :  { %2424 = vmatmul.mubr.f32.gmra.mrb[72].mxu0 %v136_v33  ;;  %v1228_v33 = vld [vmem:[%s4500_s4 + $0x50] sm:$0xff] }
  0xb6   :  { %2426 = vmatprep.mubr.f32.mxu0 %v145_v34  ;;  %v1229_v34 = vld [vmem:[%s4500_s4 + $0x58] sm:$0xff] }
  0xb9   :  { %2427 = vmatmul.mubr.f32.gmra.mrb[74].mxu0 %v154_v35 }
  0xba   :  { %2429 = vmatprep.mubr.f32.mxu0 %v163_v36 }
  0xbd   :  { %2430 = vmatmul.mubr.f32.gmra.mrb[76].mxu0 %v172_v37 }
  0xbe   :  { %2432 = vmatprep.mubr.f32.mxu0 %v181_v38  ;;  %v2762_v38 = vpack.c.bf16 %v1229_v34, %v1228_v33 }
  0xc0   :  { %2763 = vmatprep.subr.bf16.mxu1 %v2762_v38 }
  0xc1   :  { %2433 = vmatmul.mubr.f32.gmra.mrb[78].mxu0 %v190_v39  ;;  %2765 = vmatpush3.bf16.msra.mxu1 %v2762_v38 }
  0xc2   :  { %2767 = vmatprep.subr.bf16.mxu1 %v2766_v48 }
  0xc5   :  { %2769 = vmatpush3.bf16.msra.mxu1 %v2766_v48 }
  0xf8   :  { %v1978_v49 = vpop.f32.mrb[0].mxu0 }
  0xf9   :  { %v2058_v52 = vpop.f32.mrb[0].mxu1  ;;  %v1979_v53 = vpop.f32.mrb[1].mxu0 }
  0xfa   :  { %v1980_v55 = vadd.f32 %v1979_v53, %v1978_v49  ;;  %v2059_v56 = vpop.f32.mrb[1].mxu1  ;;  %v1232_v53 = vld [vmem:[%s4500_s4 + $0x70] sm:$0xff] }
  0xfb   :  { %v2060_v57 = vadd.f32 %v2059_v56, %v2058_v52 }
  0xfc   :  { %v1981_v58 = vpop.f32.mrb[2].mxu0 }
  0xfd   :  { %v3963_v59 = vadd.f32 %v2060_v57, %v1980_v55  ;;  %v2061_v60 = vpop.f32.mrb[2].mxu1  ;;  %v1982_v61 = vpop.f32.mrb[3].mxu0 }
  0xfe   :  { %v1983_v62 = vadd.f32 %v1982_v61, %v1981_v58  ;;  %v2062_v63 = vpop.f32.mrb[3].mxu1  ;;  %v2770_v58 = vpack.c.bf16 %v1233_v54, %v1232_v53 }
  0xff   :  { %v2063_v0 = vadd.f32 %v2062_v63, %v2061_v60 }
 0x100   :  { %v1984_v1 = vpop.f32.mrb[4].mxu0  ;;  %2771 = vmatprep.subr.bf16.mxu1 %v2770_v58 }
 0x101   :  { %v3965_v2 = vadd.f32 %v2063_v0, %v1983_v62  ;;  %v2064_v3 = vpop.f32.mrb[4].mxu1  ;;  %v1985_v4 = vpop.f32.mrb[5].mxu0  ;;  %2773 = vmatpush3.bf16.msra.mxu1 %v2770_v58 }
 0x102   :  { %v1986_v5 = vadd.f32 %v1985_v4, %v1984_v1  ;;  %v2065_v6 = vpop.f32.mrb[5].mxu1 }
 0x103   :  { %v2066_v7 = vadd.f32 %v2065_v6, %v2064_v3 }
 0x104   :  { %v1987_v8 = vpop.f32.mrb[6].mxu0 }
 0x105   :  { %v3967_v9 = vadd.f32 %v2066_v7, %v1986_v5  ;;  %v2067_v10 = vpop.f32.mrb[6].mxu1  ;;  %v1988_v11 = vpop.f32.mrb[7].mxu0 }
 0x106   :  { %v1989_v12 = vadd.f32 %v1988_v11, %v1987_v8  ;;  %v2068_v13 = vpop.f32.mrb[7].mxu1 }
 0x107   :  { %v2069_v14 = vadd.f32 %v2068_v13, %v2067_v10 }
 0x108   :  { %v1990_v15 = vpop.f32.mrb[8].mxu0 }
 0x109   :  { %v3969_v16 = vadd.f32 %v2069_v14, %v1989_v12  ;;  %v2070_v17 = vpop.f32.mrb[8].mxu1  ;;  %v1991_v18 = vpop.f32.mrb[9].mxu0 }
 0x10a   :  { %v1992_v19 = vadd.f32 %v1991_v18, %v1990_v15  ;;  %v2071_v20 = vpop.f32.mrb[9].mxu1 }
 0x10b   :  { %v2072_v21 = vadd.f32 %v2071_v20, %v2070_v17 }
 0x10c   :  { %v1993_v24 = vpop.f32.mrb[10].mxu0 }
 0x10d   :  { %v3977_v26 = vadd.f32 %v2072_v21, %v1992_v19  ;;  %v2073_v27 = vpop.f32.mrb[10].mxu1  ;;  %v1994_v28 = vpop.f32.mrb[11].mxu0 }
 0x10e   :  { %v1995_v29 = vadd.f32 %v1994_v28, %v1993_v24  ;;  %v2074_v30 = vpop.f32.mrb[11].mxu1 }
 0x10f   :  { %v2075_v31 = vadd.f32 %v2074_v30, %v2073_v27 }
 0x110   :  { %v1996_v32 = vpop.f32.mrb[12].mxu0 }
 0x111   :  { %v3985_v35 = vadd.f32 %v2075_v31, %v1995_v29  ;;  %v2076_v36 = vpop.f32.mrb[12].mxu1  ;;  %v1997_v37 = vpop.f32.mrb[13].mxu0 }
 0x112   :  { %v1998_v39 = vadd.f32 %v1997_v37, %v1996_v32  ;;  %v2077_v40 = vpop.f32.mrb[13].mxu1 }
 0x113   :  { %v2078_v41 = vadd.f32 %v2077_v40, %v2076_v36 }
 0x114   :  { %v1999_v42 = vpop.f32.mrb[14].mxu0 }
 0x115   :  { %v3993_v45 = vadd.f32 %v2078_v41, %v1998_v39  ;;  %v2079_v46 = vpop.f32.mrb[14].mxu1  ;;  %v2000_v47 = vpop.f32.mrb[15].mxu0 }
 0x116   :  { %v2001_v49 = vadd.f32 %v2000_v47, %v1999_v42  ;;  %v2080_v50 = vpop.f32.mrb[15].mxu1 }
 0x117   :  { %v2081_v51 = vadd.f32 %v2080_v50, %v2079_v46 }
 0x118   :  { %v2002_v52 = vpop.f32.mrb[16].mxu0 }
 0x119   :  { %v4001_v55 = vadd.f32 %v2081_v51, %v2001_v49  ;;  %v2082_v56 = vpop.f32.mrb[16].mxu1  ;;  %v2003_v57 = vpop.f32.mrb[17].mxu0 }
 0x11a   :  { %v2004_v60 = vadd.f32 %v2003_v57, %v2002_v52  ;;  %v2083_v61 = vpop.f32.mrb[17].mxu1 }
 0x11b   :  { %v2084_v62 = vadd.f32 %v2083_v61, %v2082_v56 }
 0x11c   :  { %v2005_v63 = vpop.f32.mrb[18].mxu0 }
 0x11d   :  { %v4003_v0 = vadd.f32 %v2084_v62, %v2004_v60  ;;  %v2085_v1 = vpop.f32.mrb[18].mxu1  ;;  %v2006_v3 = vpop.f32.mrb[19].mxu0 }
 0x11e   :  { %v2007_v4 = vadd.f32 %v2006_v3, %v2005_v63  ;;  %v2086_v5 = vpop.f32.mrb[19].mxu1  ;;  %v1441_v63 = vld [vmem:[%s4503_s7] sm:$0xff]  ;;  %v1443_v3 = vld [vmem:[%s4503_s7 + $0x10] sm:$0xff] }
 0x11f   :  { %v2087_v6 = vadd.f32 %v2086_v5, %v2085_v1  ;;  %v1442_v1 = vld [vmem:[%s4503_s7 + $0x8] sm:$0xff] }
 0x120   :  { %v2008_v7 = vpop.f32.mrb[20].mxu0 }
 0x121   :  { %v4005_v8 = vadd.f32 %v2087_v6, %v2007_v4  ;;  %v2088_v10 = vpop.f32.mrb[20].mxu1  ;;  %v2009_v11 = vpop.f32.mrb[21].mxu0  ;;  %v2774_v6 = vpack.c.bf16 %v1442_v1, %v1441_v63 }
 0x122   :  { %v2010_v12 = vadd.f32 %v2009_v11, %v2008_v7  ;;  %v2089_v13 = vpop.f32.mrb[21].mxu1  ;;  %v1444_v7 = vld [vmem:[%s4503_s7 + $0x18] sm:$0xff] }
 0x123   :  { %v2090_v14 = vadd.f32 %v2089_v13, %v2088_v10  ;;  %v1445_v13 = vld [vmem:[%s4503_s7 + $0x20] sm:$0xff]  ;;  %2775 = vmatprep.subr.bf16.mxu0 %v2774_v6 }
 0x124   :  { %v2011_v15 = vpop.f32.mrb[22].mxu0  ;;  %2777 = vmatpush3.bf16.msra.mxu0 %v2774_v6 }
 0x125   :  { %v4007_v17 = vadd.f32 %v2090_v14, %v2010_v12  ;;  %v2091_v18 = vpop.f32.mrb[22].mxu1  ;;  %v2012_v19 = vpop.f32.mrb[23].mxu0  ;;  %v2778_v12 = vpack.c.bf16 %v1444_v7, %v1443_v3  ;;  %v1446_v14 = vld [vmem:[%s4503_s7 + $0x28] sm:$0xff] }
 0x126   :  { %v2013_v20 = vadd.f32 %v2012_v19, %v2011_v15  ;;  %v2092_v21 = vpop.f32.mrb[23].mxu1 }
 0x127   :  { %v2093_v22 = vadd.f32 %v2092_v21, %v2091_v18  ;;  %2779 = vmatprep.subr.bf16.mxu0 %v2778_v12 }
 0x128   :  { %v2014_v23 = vpop.f32.mrb[24].mxu0  ;;  %2781 = vmatpush3.bf16.msra.mxu0 %v2778_v12 }
 0x129   :  { %v4009_v24 = vadd.f32 %v2093_v22, %v2013_v20  ;;  %v2094_v25 = vpop.f32.mrb[24].mxu1  ;;  %v2015_v27 = vpop.f32.mrb[25].mxu0  ;;  %v2782_v22 = vpack.c.bf16 %v1446_v14, %v1445_v13 }
 0x12a   :  { %v2016_v28 = vadd.f32 %v2015_v27, %v2014_v23  ;;  %v2095_v29 = vpop.f32.mrb[25].mxu1  ;;  %v1447_v27 = vld [vmem:[%s4503_s7 + $0x30] sm:$0xff] }
 0x12b   :  { %v2096_v30 = vadd.f32 %v2095_v29, %v2094_v25  ;;  %2783 = vmatprep.subr.bf16.mxu0 %v2782_v22 }
 0x12c   :  { %v2017_v31 = vpop.f32.mrb[26].mxu0  ;;  %2785 = vmatpush3.bf16.msra.mxu0 %v2782_v22 }
 0x12d   :  { %v4011_v32 = vadd.f32 %v2096_v30, %v2016_v28  ;;  %v2097_v33 = vpop.f32.mrb[26].mxu1  ;;  %v2018_v34 = vpop.f32.mrb[27].mxu0  ;;  %v1448_v28 = vld [vmem:[%s4503_s7 + $0x38] sm:$0xff] }
 0x12e   :  { %v2019_v36 = vadd.f32 %v2018_v34, %v2017_v31  ;;  %v2098_v37 = vpop.f32.mrb[27].mxu1 }
 0x12f   :  { %v2099_v38 = vadd.f32 %v2098_v37, %v2097_v33 }
 0x130   :  { %v2020_v39 = vpop.f32.mrb[28].mxu0 }
 0x131   :  { %v4013_v40 = vadd.f32 %v2099_v38, %v2019_v36  ;;  %v2100_v41 = vpop.f32.mrb[28].mxu1  ;;  %v2021_v42 = vpop.f32.mrb[29].mxu0  ;;  %v2786_v36 = vpack.c.bf16 %v1448_v28, %v1447_v27 }
 0x132   :  { %v2022_v43 = vadd.f32 %v2021_v42, %v2020_v39  ;;  %v2101_v44 = vpop.f32.mrb[29].mxu1  ;;  %v1449_v39 = vld [vmem:[%s4503_s7 + $0x40] sm:$0xff] }
 0x133   :  { %v2102_v46 = vadd.f32 %v2101_v44, %v2100_v41  ;;  %v1450_v41 = vld [vmem:[%s4503_s7 + $0x48] sm:$0xff]  ;;  %2787 = vmatprep.subr.bf16.mxu0 %v2786_v36 }
 0x134   :  { %v2023_v47 = vpop.f32.mrb[30].mxu0  ;;  %2789 = vmatpush3.bf16.msra.mxu0 %v2786_v36 }
 0x135   :  { %v4015_v48 = vadd.f32 %v2102_v46, %v2022_v43  ;;  %v2103_v49 = vpop.f32.mrb[30].mxu1  ;;  %v2024_v50 = vpop.f32.mrb[31].mxu0 }
 0x136   :  { %v2025_v51 = vadd.f32 %v2024_v50, %v2023_v47  ;;  %v2104_v52 = vpop.f32.mrb[31].mxu1 }
 0x137   :  { %v2105_v53 = vadd.f32 %v2104_v52, %v2103_v49  ;;  %v2790_v49 = vpack.c.bf16 %v1450_v41, %v1449_v39  ;;  %v1451_v52 = vld [vmem:[%s4503_s7 + $0x50] sm:$0xff] }
 0x138   :  { %v2138_v54 = vpop.f32.mrb[32].mxu0 }
 0x139   :  { %v4017_v56 = vadd.f32 %v2105_v53, %v2025_v51  ;;  %v2139_v57 = vpop.f32.mrb[33].mxu0  ;;  %v2218_v58 = vpop.f32.mrb[32].mxu1  ;;  %v1452_v53 = vld [vmem:[%s4503_s7 + $0x58] sm:$0xff]  ;;  %2791 = vmatprep.subr.bf16.mxu0 %v2790_v49 }
 0x13a   :  { %v2140_v60 = vadd.f32 %v2139_v57, %v2138_v54  ;;  %v2219_v61 = vpop.f32.mrb[33].mxu1  ;;  %2793 = vmatpush3.bf16.msra.mxu0 %v2790_v49 }
 0x13b   :  { %v2220_v62 = vadd.f32 %v2219_v61, %v2218_v58 }
 0x13c   :  { %v692_v4 = vadd.f32 %v2140_v60, %v3963_v59  ;;  %v2141_v5 = vpop.f32.mrb[34].mxu0 }
 0x13d   :  { %v2142_v10 = vpop.f32.mrb[35].mxu0  ;;  %v2221_v11 = vpop.f32.mrb[34].mxu1 }
 0x13e   :  { %v2143_v15 = vadd.f32 %v2142_v10, %v2141_v5  ;;  %v2222_v18 = vpop.f32.mrb[35].mxu1  ;;  %v4038_v59 = vadd.f32 %v2220_v62, %v692_v4  ;;  %v2794_v62 = vpack.c.bf16 %v1452_v53, %v1451_v52 }
 0x13f   :  { %v2223_v19 = vadd.f32 %v2222_v18, %v2221_v11 }
 0x140   :  { %v697_v20 = vadd.f32 %v2143_v15, %v3965_v2  ;;  %v2144_v21 = vpop.f32.mrb[36].mxu0  ;;  %2795 = vmatprep.subr.bf16.mxu0 %v2794_v62 }
 0x141   :  { %v2145_v23 = vpop.f32.mrb[37].mxu0  ;;  %v2224_v25 = vpop.f32.mrb[36].mxu1  ;;  %2797 = vmatpush3.bf16.msra.mxu0 %v2794_v62 }
 0x142   :  { %v2146_v29 = vadd.f32 %v2145_v23, %v2144_v21  ;;  %v2225_v30 = vpop.f32.mrb[37].mxu1  ;;  %v4047_v31 = vadd.f32 %v2223_v19, %v697_v20 }
 0x143   :  { %v2226_v33 = vadd.f32 %v2225_v30, %v2224_v25 }
 0x144   :  { %v702_v2 = vadd.f32 %v2146_v29, %v3967_v9  ;;  %v2147_v34 = vpop.f32.mrb[38].mxu0 }
 0x145   :  { %v2148_v37 = vpop.f32.mrb[39].mxu0  ;;  %v2227_v38 = vpop.f32.mrb[38].mxu1 }
 0x146   :  { %v2149_v42 = vadd.f32 %v2148_v37, %v2147_v34  ;;  %v2228_v43 = vpop.f32.mrb[39].mxu1  ;;  %v4056_v44 = vadd.f32 %v2226_v33, %v702_v2 }
 0x147   :  { %v2229_v46 = vadd.f32 %v2228_v43, %v2227_v38 }
 0x148   :  { %v707_v9 = vadd.f32 %v2149_v42, %v3969_v16  ;;  %v2150_v47 = vpop.f32.mrb[40].mxu0 }
 0x149   :  { %v2151_v50 = vpop.f32.mrb[41].mxu0  ;;  %v2230_v51 = vpop.f32.mrb[40].mxu1 }
 0x14a   :  { %v2152_v54 = vadd.f32 %v2151_v50, %v2150_v47  ;;  %v2231_v57 = vpop.f32.mrb[41].mxu1  ;;  %v4065_v58 = vadd.f32 %v2229_v46, %v707_v9 }
 0x14b   :  { %v2232_v60 = vadd.f32 %v2231_v57, %v2230_v51 }
 0x14c   :  { %v712_v16 = vadd.f32 %v2152_v54, %v3977_v26  ;;  %v2153_v61 = vpop.f32.mrb[42].mxu0 }
 0x14d   :  { %v2154_v63 = vpop.f32.mrb[43].mxu0  ;;  %v2233_v1 = vpop.f32.mrb[42].mxu1 }
 0x14e   :  { %v2155_v3 = vadd.f32 %v2154_v63, %v2153_v61  ;;  %v2234_v4 = vpop.f32.mrb[43].mxu1  ;;  %v4068_v5 = vadd.f32 %v2232_v60, %v712_v16 }
 0x14f   :  { %v2235_v6 = vadd.f32 %v2234_v4, %v2233_v1 }
 0x150   :  { %v717_v7 = vadd.f32 %v2155_v3, %v3985_v35  ;;  %v2156_v10 = vpop.f32.mrb[44].mxu0 }
 0x151   :  { %v2157_v11 = vpop.f32.mrb[45].mxu0  ;;  %v2236_v12 = vpop.f32.mrb[44].mxu1 }
 0x152   :  { %v2158_v13 = vadd.f32 %v2157_v11, %v2156_v10  ;;  %v2237_v14 = vpop.f32.mrb[45].mxu1  ;;  %v4071_v26 = vadd.f32 %v2235_v6, %v717_v7 }
 0x153   :  { %v2238_v15 = vadd.f32 %v2237_v14, %v2236_v12 }
 0x154   :  { %v722_v18 = vadd.f32 %v2158_v13, %v3993_v45  ;;  %v2159_v19 = vpop.f32.mrb[46].mxu0 }
 0x155   :  { %v2160_v20 = vpop.f32.mrb[47].mxu0  ;;  %v2239_v21 = vpop.f32.mrb[46].mxu1 }
 0x156   :  { %v2161_v22 = vadd.f32 %v2160_v20, %v2159_v19  ;;  %v2240_v23 = vpop.f32.mrb[47].mxu1  ;;  %v4074_v25 = vadd.f32 %v2238_v15, %v722_v18 }
 0x157   :  { %v2241_v35 = vadd.f32 %v2240_v23, %v2239_v21 }
 0x158   :  { %v727_v27 = vadd.f32 %v2161_v22, %v4001_v55  ;;  %v2162_v28 = vpop.f32.mrb[48].mxu0 }
 0x159   :  { %v2163_v29 = vpop.f32.mrb[49].mxu0  ;;  %v2242_v30 = vpop.f32.mrb[48].mxu1 }
 0x15a   :  { %v2164_v33 = vadd.f32 %v2163_v29, %v2162_v28  ;;  %v2243_v2 = vpop.f32.mrb[49].mxu1  ;;  %v4077_v34 = vadd.f32 %v2241_v35, %v727_v27 }
 0x15b   :  { %v2244_v36 = vadd.f32 %v2243_v2, %v2242_v30 }
 0x15c   :  { %v732_v45 = vadd.f32 %v2164_v33, %v4003_v0  ;;  %v2165_v37 = vpop.f32.mrb[50].mxu0 }
 0x15d   :  { %v2166_v38 = vpop.f32.mrb[51].mxu0  ;;  %v2245_v39 = vpop.f32.mrb[50].mxu1 }
 0x15e   :  { %v2167_v41 = vadd.f32 %v2166_v38, %v2165_v37  ;;  %v2246_v42 = vpop.f32.mrb[51].mxu1  ;;  %v4080_v43 = vadd.f32 %v2244_v36, %v732_v45 }
 0x15f   :  { %v2247_v46 = vadd.f32 %v2246_v42, %v2245_v39 }
 0x160   :  { %v737_v55 = vadd.f32 %v2167_v41, %v4005_v8  ;;  %v2168_v9 = vpop.f32.mrb[52].mxu0  ;;  %v4104_v41 = vld [vmem:[%s4498_s2] ss:$0 sm:$0xff] }
 0x161   :  { %v2169_v47 = vpop.f32.mrb[53].mxu0  ;;  %v2248_v49 = vpop.f32.mrb[52].mxu1 }
 0x162   :  { %v2170_v50 = vadd.f32 %v2169_v47, %v2168_v9  ;;  %v2249_v51 = vpop.f32.mrb[53].mxu1  ;;  %v4083_v52 = vadd.f32 %v2247_v46, %v737_v55 }
 0x163   :  { %v2250_v53 = vadd.f32 %v2249_v51, %v2248_v49 }
 0x164   :  { %v742_v0 = vadd.f32 %v2170_v50, %v4007_v17  ;;  %v2171_v54 = vpop.f32.mrb[54].mxu0 }
 0x165   :  { %v2172_v57 = vpop.f32.mrb[55].mxu0  ;;  %v2251_v60 = vpop.f32.mrb[54].mxu1 }
 0x166   :  { %v2173_v16 = vadd.f32 %v2172_v57, %v2171_v54  ;;  %v2252_v61 = vpop.f32.mrb[55].mxu1  ;;  %v4086_v62 = vadd.f32 %v2250_v53, %v742_v0 }
 0x167   :  { %v2253_v63 = vadd.f32 %v2252_v61, %v2251_v60 }
 0x168   :  { %v747_v8 = vadd.f32 %v2173_v16, %v4009_v24  ;;  %v2174_v1 = vpop.f32.mrb[56].mxu0 }
 0x169   :  { %v2175_v3 = vpop.f32.mrb[57].mxu0  ;;  %v2254_v4 = vpop.f32.mrb[56].mxu1 }
 0x16a   :  { %v2176_v6 = vadd.f32 %v2175_v3, %v2174_v1  ;;  %v2255_v7 = vpop.f32.mrb[57].mxu1  ;;  %v4089_v10 = vadd.f32 %v2253_v63, %v747_v8 }
 0x16b   :  { %v2256_v11 = vadd.f32 %v2255_v7, %v2254_v4 }
 0x16c   :  { %v752_v17 = vadd.f32 %v2176_v6, %v4011_v32  ;;  %v2177_v12 = vpop.f32.mrb[58].mxu0 }
 0x16d   :  { %v2178_v13 = vpop.f32.mrb[59].mxu0  ;;  %v2257_v14 = vpop.f32.mrb[58].mxu1 }
 0x16e   :  { %v2179_v15 = vadd.f32 %v2178_v13, %v2177_v12  ;;  %v2258_v18 = vpop.f32.mrb[59].mxu1  ;;  %v4092_v19 = vadd.f32 %v2256_v11, %v752_v17 }
 0x16f   :  { %v2259_v20 = vadd.f32 %v2258_v18, %v2257_v14 }
 0x170   :  { %v757_v24 = vadd.f32 %v2179_v15, %v4013_v40  ;;  %v2180_v21 = vpop.f32.mrb[60].mxu0 }
 0x171   :  { %v2181_v22 = vpop.f32.mrb[61].mxu0  ;;  %v2260_v23 = vpop.f32.mrb[60].mxu1 }
 0x172   :  { %v2182_v35 = vadd.f32 %v2181_v22, %v2180_v21  ;;  %v2261_v27 = vpop.f32.mrb[61].mxu1  ;;  %v4095_v28 = vadd.f32 %v2259_v20, %v757_v24 }
 0x173   :  { %v2262_v29 = vadd.f32 %v2261_v27, %v2260_v23 }
 0x174   :  { %v762_v32 = vadd.f32 %v2182_v35, %v4015_v48  ;;  %v2183_v30 = vpop.f32.mrb[62].mxu0  ;;  %v4110_v48 = vld [vmem:[%s4499_s3] ss:$0 sm:$0xff] }
 0x175   :  { %v2184_v33 = vpop.f32.mrb[63].mxu0  ;;  %v2263_v2 = vpop.f32.mrb[62].mxu1 }
 0x176   :  { %v2185_v36 = vadd.f32 %v2184_v33, %v2183_v30  ;;  %v2264_v45 = vpop.f32.mrb[63].mxu1  ;;  %v4098_v37 = vadd.f32 %v2262_v29, %v762_v32 }
 0x177   :  { %v2265_v38 = vadd.f32 %v2264_v45, %v2263_v2 }
 0x178   :  { %v767_v40 = vadd.f32 %v2185_v36, %v4017_v56  ;;  %v2413_v39 = vpop.f32.mrb[64].mxu0 }
 0x179   :  { %v987_v42 = vadd.f32 %v2413_v39, %v4047_v31  ;;  %v981_v46 = vpop.f32.mrb[65].mxu0 }
 0x17a   :  { %v982_v55 = vadd.f32 %v981_v46, %v4038_v59  ;;  %v4113_v9 = vadd.f32 %v2265_v38, %v767_v40 }
 0x17b   :  { %v1068_v56 = vmul.f32 %v4104_v41, %v987_v42 }
 0x17c   :  { %v1067_v47 = vmul.f32 %v4104_v41, %v982_v55  ;;  %v2416_v49 = vpop.f32.mrb[66].mxu0 }
 0x17d   :  { %v4118_v50 = vadd.f32 %v4110_v48, %v1068_v56  ;;  %v997_v31 = vadd.f32 %v2416_v49, %v4065_v58  ;;  %v991_v51 = vpop.f32.mrb[67].mxu0 }
 0x17e   :  { %v4122_v53 = vadd.f32 %v4110_v48, %v1067_v47  ;;  %v992_v0 = vadd.f32 %v991_v51, %v4056_v44 }
 0x17f   :  { %v1910_v59 = vmul.f32 -1.442695, %v4118_v50  ;;  %v1070_v54 = vmul.f32 %v4104_v41, %v997_v31 }
 0x180   :  { %v1909_v57 = vmul.f32 -1.442695, %v4122_v53  ;;  %v1069_v60 = vmul.f32 %v4104_v41, %v992_v0  ;;  %v2419_v16 = vpop.f32.mrb[68].mxu0 }
 0x181   :  { %2834 = vpow2.f32 %v1910_v59  ;;  %v4130_v61 = vadd.f32 %v4110_v48, %v1070_v54  ;;  %v1007_v58 = vadd.f32 %v2419_v16, %v4071_v26  ;;  %v1001_v63 = vpop.f32.mrb[69].mxu0 }
 0x182   :  { %2836 = vpow2.f32 %v1909_v57  ;;  %v4134_v8 = vadd.f32 %v4110_v48, %v1069_v60  ;;  %v1002_v44 = vadd.f32 %v1001_v63, %v4068_v5 }
 0x183   :  { %v1912_v1 = vmul.f32 -1.442695, %v4130_v61  ;;  %v1072_v3 = vmul.f32 %v4104_v41, %v1007_v58 }
 0x184   :  { %v1911_v4 = vmul.f32 -1.442695, %v4134_v8  ;;  %v1071_v6 = vmul.f32 %v4104_v41, %v1002_v44  ;;  %v2422_v7 = vpop.f32.mrb[70].mxu0 }
 0x185   :  { %2838 = vpow2.f32 %v1912_v1  ;;  %v4142_v11 = vadd.f32 %v4110_v48, %v1072_v3  ;;  %v1017_v26 = vadd.f32 %v2422_v7, %v4077_v34  ;;  %v1011_v17 = vpop.f32.mrb[71].mxu0 }
 0x186   :  { %2840 = vpow2.f32 %v1911_v4  ;;  %v4146_v12 = vadd.f32 %v4110_v48, %v1071_v6  ;;  %v1012_v5 = vadd.f32 %v1011_v17, %v4074_v25 }
 0x187   :  { %v1914_v13 = vmul.f32 -1.442695, %v4142_v11  ;;  %v1074_v14 = vmul.f32 %v4104_v41, %v1017_v26 }
 0x188   :  { %v1913_v15 = vmul.f32 -1.442695, %v4146_v12  ;;  %v1073_v18 = vmul.f32 %v4104_v41, %v1012_v5  ;;  %v2425_v20 = vpop.f32.mrb[72].mxu0 }
 0x189   :  { %2842 = vpow2.f32 %v1914_v13  ;;  %v4154_v24 = vadd.f32 %v4110_v48, %v1074_v14  ;;  %v1027_v34 = vadd.f32 %v2425_v20, %v4083_v52  ;;  %v1021_v21 = vpop.f32.mrb[73].mxu0 }
 0x18a   :  { %2844 = vpow2.f32 %v1913_v15  ;;  %v4158_v22 = vadd.f32 %v4110_v48, %v1073_v18  ;;  %v1022_v25 = vadd.f32 %v1021_v21, %v4080_v43 }
 0x18b   :  { %v2835_v23 = vpop.eup %2834  ;;  %v1916_v35 = vmul.f32 -1.442695, %v4154_v24  ;;  %v1076_v27 = vmul.f32 %v4104_v41, %v1027_v34 }
 0x18c   :  { %v2837_v29 = vpop.eup %2836  ;;  %v1155_v32 = vadd.f32 1.0, %v2835_v23  ;;  %v1915_v30 = vmul.f32 -1.442695, %v4158_v22  ;;  %v1075_v33 = vmul.f32 %v4104_v41, %v1022_v25  ;;  %v2428_v2 = vpop.f32.mrb[74].mxu0 }
 0x18d   :  { %v1154_v52 = vadd.f32 1.0, %v2837_v29  ;;  %2846 = vpow2.f32 %v1916_v35  ;;  %v4166_v36 = vadd.f32 %v4110_v48, %v1076_v27  ;;  %v1037_v45 = vadd.f32 %v2428_v2, %v4089_v10  ;;  %v1031_v43 = vpop.f32.mrb[75].mxu0 }
 0x18e   :  { %2848 = vrcp.f32 %v1155_v32  ;;  %v4170_v38 = vadd.f32 %v4110_v48, %v1075_v33  ;;  %v1032_v40 = vadd.f32 %v1031_v43, %v4086_v62 }
 0x18f   :  { %v2839_v39 = vpop.eup %2838  ;;  %2850 = vrcp.f32 %v1154_v52  ;;  %v1918_v42 = vmul.f32 -1.442695, %v4166_v36  ;;  %v1078_v46 = vmul.f32 %v4104_v41, %v1037_v45 }
 0x190   :  { %v2841_v55 = vpop.eup %2840  ;;  %v1157_v56 = vadd.f32 1.0, %v2839_v39  ;;  %2852 = vpow2.f32 %v1915_v30  ;;  %v1917_v47 = vmul.f32 -1.442695, %v4170_v38  ;;  %v1077_v10 = vmul.f32 %v4104_v41, %v1032_v40  ;;  %v2431_v49 = vpop.f32.mrb[76].mxu0 }
 0x191   :  { %v1156_v31 = vadd.f32 1.0, %v2841_v55  ;;  %2854 = vpow2.f32 %v1918_v42  ;;  %v4178_v51 = vadd.f32 %v4110_v48, %v1078_v46  ;;  %v1047_v62 = vadd.f32 %v2431_v49, %v4095_v28  ;;  %v1041_v0 = vpop.f32.mrb[77].mxu0 }
 0x192   :  { %2856 = vrcp.f32 %v1157_v56  ;;  %v4182_v59 = vadd.f32 %v4110_v48, %v1077_v10  ;;  %v1042_v54 = vadd.f32 %v1041_v0, %v4092_v19 }
 0x193   :  { %v2843_v57 = vpop.eup %2842  ;;  %2858 = vrcp.f32 %v1156_v31  ;;  %v1920_v60 = vmul.f32 -1.442695, %v4178_v51  ;;  %v1080_v16 = vmul.f32 %v4104_v41, %v1047_v62 }
 0x194   :  { %v2845_v58 = vpop.eup %2844  ;;  %v1159_v63 = vadd.f32 1.0, %v2843_v57  ;;  %2860 = vpow2.f32 %v1917_v47  ;;  %v1919_v44 = vmul.f32 -1.442695, %v4182_v59  ;;  %v1079_v28 = vmul.f32 %v4104_v41, %v1042_v54  ;;  %v2434_v1 = vpop.f32.mrb[78].mxu0 }
 0x195   :  { %v1158_v3 = vadd.f32 1.0, %v2845_v58  ;;  %2862 = vpow2.f32 %v1920_v60  ;;  %v4190_v4 = vadd.f32 %v4110_v48, %v1080_v16  ;;  %v1057_v19 = vadd.f32 %v2434_v1, %v4113_v9  ;;  %v1051_v6 = vpop.f32.mrb[79].mxu0 }
 0x196   :  { %2864 = vrcp.f32 %v1159_v63  ;;  %v4194_v7 = vadd.f32 %v4110_v48, %v1079_v28  ;;  %v1052_v26 = vadd.f32 %v1051_v6, %v4098_v37 }
 0x197   :  { %v2847_v17 = vpop.eup %2846  ;;  %2866 = vrcp.f32 %v1158_v3  ;;  %v1922_v5 = vmul.f32 -1.442695, %v4190_v4  ;;  %v1082_v13 = vmul.f32 %v4104_v41, %v1057_v19 }
 0x198   :  { %v2849_v14 = vpop.eup %2848  ;;  %v1161_v15 = vadd.f32 1.0, %v2847_v17  ;;  %2868 = vpow2.f32 %v1919_v44  ;;  %v1921_v18 = vmul.f32 -1.442695, %v4194_v7  ;;  %v1081_v9 = vmul.f32 %v4104_v41, %v1052_v26  ;;  %v1456_v17 = vld [vmem:[%s4503_s7 + $0x78] sm:$0xff] }
 0x199   :  { %v2851_v20 = vpop.eup %2850  ;;  %2870 = vpow2.f32 %v1922_v5  ;;  %v4202_v34 = vadd.f32 %v4110_v48, %v1082_v13  ;;  %v1203_v35 = vmul.f32 %v2849_v14, %v4118_v50  ;;  %v4240_v13 = vld [vmem:[%s4501_s5] ss:$0 sm:$0xff] }
 0x19a   :  { %v2853_v21 = vpop.eup %2852  ;;  %v4205_v37 = vadd.f32 %v4110_v48, %v1081_v9  ;;  %v1202_v25 = vmul.f32 %v2851_v20, %v4122_v53  ;;  %2872 = vpow2.f32 %v1921_v18 }
 0x19b   :  { %v2855_v23 = vpop.eup %2854  ;;  %v1160_v27 = vadd.f32 1.0, %v2853_v21  ;;  %v1924_v29 = vmul.f32 -1.442695, %v4202_v34  ;;  %2874 = vrcp.f32 %v1161_v15  ;;  %v4245_v15 = vld [vmem:[%s4502_s6] ss:$0 sm:$0xff] }
 0x19c   :  { %v2857_v32 = vpop.eup %2856  ;;  %v1163_v41 = vadd.f32 1.0, %v2855_v23  ;;  %v1923_v30 = vmul.f32 -1.442695, %v4205_v37  ;;  %2467 = vmatprep.mubr.f32.mxu1 %v1202_v25 }
 0x19d   :  { %v2859_v33 = vpop.eup %2858  ;;  %2876 = vrcp.f32 %v1160_v27  ;;  %2468 = vmatmul.mubr.f32.vlgmr.msra.gmra.mrb[64].mxu1 %v1203_v35  ;;  %v1205_v50 = vmul.f32 %v2857_v32, %v4130_v61  ;;  %v2962_v27 = vld [vmem:[%s4496_s0 + $0x20] sm:$0xff]  ;;  %v2963_v32 = vld [vmem:[%s4496_s0 + $0x68] sm:$0xff] }
 0x19e   :  { %v2861_v48 = vpop.eup %2860  ;;  %2878 = vrcp.f32 %v1163_v41  ;;  %v1204_v53 = vmul.f32 %v2859_v33, %v4134_v8 }
 0x19f   :  { %v2863_v2 = vpop.eup %2862  ;;  %v1162_v52 = vadd.f32 1.0, %v2861_v48  ;;  %2880 = vpow2.f32 %v1924_v29 }
 0x1a0   :  { %v2865_v45 = vpop.eup %2864  ;;  %v1165_v43 = vadd.f32 1.0, %v2863_v2  ;;  %2882 = vpow2.f32 %v1923_v30  ;;  %2470 = vmatprep.mubr.f32.mxu1 %v1204_v53 }
 0x1a1   :  { %v2867_v40 = vpop.eup %2866  ;;  %2884 = vrcp.f32 %v1162_v52  ;;  %2471 = vmatmul.mubr.f32.gmra.mrb[66].mxu1 %v1205_v50  ;;  %v1207_v56 = vmul.f32 %v2865_v45, %v4142_v11  ;;  %v2964_v50 = vld [vmem:[%s4496_s0 + $0xb0] sm:$0xff] }
 0x1a2   :  { %v2869_v39 = vpop.eup %2868  ;;  %v1206_v42 = vmul.f32 %v2867_v40, %v4146_v12  ;;  %2886 = vrcp.f32 %v1165_v43  ;;  %v2965_v40 = vld [vmem:[%s4496_s0 + $0xf8] sm:$0xff] }
 0x1a3   :  { %v2871_v46 = vpop.eup %2870  ;;  %v1164_v55 = vadd.f32 1.0, %v2869_v39 }
 0x1a4   :  { %v1167_v8 = vadd.f32 1.0, %v2871_v46  ;;  %2473 = vmatprep.mubr.f32.mxu1 %v1206_v42  ;;  %v2873_v47 = vpop.eup %2872 }
 0x1a5   :  { %2888 = vrcp.f32 %v1164_v55  ;;  %2474 = vmatmul.mubr.f32.gmra.mrb[68].mxu1 %v1207_v56  ;;  %v2875_v61 = vpop.eup %2874  ;;  %v1166_v10 = vadd.f32 1.0, %v2873_v47  ;;  %v2966_v55 = vld [vmem:[%s4496_s0 + $0x140] sm:$0xff] }
 0x1a6   :  { %2890 = vrcp.f32 %v1167_v8  ;;  %v1209_v12 = vmul.f32 %v2875_v61, %v4154_v24  ;;  %v2967_v61 = vld [vmem:[%s4496_s0 + $0x188] sm:$0xff] }
 0x1a7   :  { %v2877_v49 = vpop.eup %2876  ;;  %2892 = vrcp.f32 %v1166_v10 }
 0x1a8   :  { %v2879_v31 = vpop.eup %2878  ;;  %v1208_v62 = vmul.f32 %v2877_v49, %v4158_v22 }
 0x1a9   :  { %v2881_v0 = vpop.eup %2880  ;;  %v1211_v58 = vmul.f32 %v2879_v31, %v4166_v36 }
 0x1aa   :  { %v2883_v54 = vpop.eup %2882  ;;  %v1169_v57 = vadd.f32 1.0, %v2881_v0  ;;  %2476 = vmatprep.mubr.f32.mxu1 %v1208_v62 }
 0x1ab   :  { %v2885_v11 = vpop.eup %2884  ;;  %v1168_v60 = vadd.f32 1.0, %v2883_v54  ;;  %2477 = vmatmul.mubr.f32.gmra.mrb[70].mxu1 %v1209_v12 }
 0x1ac   :  { %2894 = vrcp.f32 %v1169_v57  ;;  %v1210_v16 = vmul.f32 %v2885_v11, %v4170_v38  ;;  %v2887_v63 = vpop.eup %2886  ;;  %v2968_v11 = vld [vmem:[%s4496_s0 + $0x1d0] sm:$0xff] }
 0x1ad   :  { %2896 = vrcp.f32 %v1168_v60  ;;  %v1213_v24 = vmul.f32 %v2887_v63, %v4178_v51  ;;  %v1453_v51 = vld [vmem:[%s4503_s7 + $0x60] sm:$0xff] }
 0x1ae   :  { %2479 = vmatprep.mubr.f32.mxu1 %v1210_v16 }
 0x1af   :  { %v2889_v44 = vpop.eup %2888  ;;  %2480 = vmatmul.mubr.f32.gmra.mrb[72].mxu1 %v1211_v58  ;;  %v2969_v58 = vld [vmem:[%s4496_s0 + $0x218] sm:$0xff] }
 0x1b0   :  { %v1212_v22 = vmul.f32 %v2889_v44, %v4182_v59  ;;  %v2891_v28 = vpop.eup %2890  ;;  %v1454_v59 = vld [vmem:[%s4503_s7 + $0x68] sm:$0xff] }
 0x1b1   :  { %v2893_v1 = vpop.eup %2892  ;;  %v1215_v38 = vmul.f32 %v2891_v28, %v4190_v4  ;;  %v1455_v4 = vld [vmem:[%s4503_s7 + $0x70] sm:$0xff] }
 0x1b2   :  { %2482 = vmatprep.mubr.f32.mxu1 %v1212_v22  ;;  %v1214_v3 = vmul.f32 %v2893_v1, %v4194_v7  ;;  %v2798_v7 = vpack.c.bf16 %v1454_v59, %v1453_v51  ;;  %v2802_v5 = vpack.c.bf16 %v1456_v17, %v1455_v4  ;;  %v2972_v17 = vld [vmem:[%s4496_s0 + $0x2f0] sm:$0xff] }
 0x1b3   :  { %2483 = vmatmul.mubr.f32.gmra.mrb[74].mxu1 %v1213_v24 }
 0x1b4   :  { %2485 = vmatprep.mubr.f32.mxu1 %v1214_v3  ;;  %2799 = vmatprep.subr.bf16.mxu0 %v2798_v7  ;;  %v2970_v3 = vld [vmem:[%s4496_s0 + $0x260] sm:$0xff] }
 0x1b5   :  { %2801 = vmatpush3.bf16.msra.mxu0 %v2798_v7 }
 0x1b6   :  { %v2895_v19 = vpop.eup %2894  ;;  %2803 = vmatprep.subr.bf16.mxu0 %v2802_v5 }
 0x1b7   :  { %v2897_v6 = vpop.eup %2896  ;;  %2486 = vmatmul.mubr.f32.gmra.mrb[76].mxu1 %v1215_v38  ;;  %v1217_v26 = vmul.f32 %v2895_v19, %v4202_v34 }
 0x1b8   :  { %v1216_v36 = vmul.f32 %v2897_v6, %v4205_v37  ;;  %v2971_v6 = vld [vmem:[%s4496_s0 + $0x2a8] sm:$0xff] }
 0x1b9   :  { %2805 = vmatpush3.bf16.msra.mxu0 %v2802_v5 }
 0x1ba   :  { %2488 = vmatprep.mubr.f32.mxu1 %v1216_v36 }
 0x1bb   :  { %2489 = vmatmul.mubr.f32.gmra.mrb[78].mxu1 %v1217_v26 }
 0x270   :  { %v2469_v14 = vpop.f32.mrb[64].mxu1 }
 0x271   :  { %v1387_v18 = vmul.f32 %v2469_v14, %v4240_v13  ;;  %v1300_v9 = vpop.f32.mrb[65].mxu1 }
 0x272   :  { %v1386_v20 = vmul.f32 %v4240_v13, %v1300_v9 }
 0x273   :  { %v1410_v34 = vadd.f32 %v4245_v15, %v1387_v18  ;;  %v2973_v18 = vld [vmem:[%s4496_s0 + $0x338] sm:$0xff] }
 0x274   :  { %v1409_v21 = vadd.f32 %v4245_v15, %v1386_v20  ;;  %v2472_v37 = vpop.f32.mrb[66].mxu1 }
 0x275   :  { %v1389_v25 = vmul.f32 %v2472_v37, %v4240_v13  ;;  %v1310_v23 = vpop.f32.mrb[67].mxu1  ;;  %v1426_v41 = vadd.f32 %v2963_v32, %v1410_v34 }
 0x276   :  { %v1388_v35 = vmul.f32 %v4240_v13, %v1310_v23  ;;  %v1425_v29 = vadd.f32 %v2962_v27, %v1409_v21  ;;  %v2974_v23 = vld [vmem:[%s4496_s0 + $0x380] sm:$0xff] }
 0x277   :  { %v1412_v30 = vadd.f32 %v4245_v15, %v1389_v25 }
 0x278   :  { %v1411_v33 = vadd.f32 %v4245_v15, %v1388_v35  ;;  %v2475_v48 = vpop.f32.mrb[68].mxu1  ;;  %2523 = vmatprep.mubr.f32.mxu0 %v1425_v29  ;;  %v2975_v29 = vld [vmem:[%s4496_s0 + $0x3c8] sm:$0xff] }
 0x279   :  { %v1391_v53 = vmul.f32 %v2475_v48, %v4240_v13  ;;  %v1320_v2 = vpop.f32.mrb[69].mxu1  ;;  %2524 = vmatmul.mubr.f32.vlgmr.msra.gmra.mrb[80].mxu0 %v1426_v41  ;;  %v1428_v39 = vadd.f32 %v2965_v40, %v1412_v30  ;;  %v1803_v40 = vld [vmem:[%s4506_s10 + $0x20] sm:$0xff] }
 0x27a   :  { %v1390_v52 = vmul.f32 %v4240_v13, %v1320_v2  ;;  %v1427_v45 = vadd.f32 %v2964_v50, %v1411_v33  ;;  %v2977_v33 = vld [vmem:[%s4496_s0 + $0x458] sm:$0xff]  ;;  %v1801_v50 = vld [vmem:[%s4506_s10 + $0x10] sm:$0xff] }
 0x27b   :  { %v1414_v43 = vadd.f32 %v4245_v15, %v1391_v53  ;;  %v1799_v53 = vld [vmem:[%s4506_s10] sm:$0xff] }
 0x27c   :  { %v1413_v42 = vadd.f32 %v4245_v15, %v1390_v52  ;;  %2526 = vmatprep.mubr.f32.mxu0 %v1427_v45  ;;  %v3002_v52 = vmov 0.0|0.0   ;;  %v1802_v45 = vld [vmem:[%s4506_s10 + $0x18] sm:$0xff] }
 0x27d   :  { %2527 = vmatmul.mubr.f32.gmra.mrb[82].mxu0 %v1428_v39  ;;  %v1430_v10 = vadd.f32 %v2967_v61, %v1414_v43  ;;  %2806 = vmatprep.subr.bf16.mxu1 %v3002_v52  ;;  %v2810_v43 = vpack.c.bf16 %v1802_v45, %v1801_v50  ;;  %v1804_v39 = vld [vmem:[%s4506_s10 + $0x28] sm:$0xff] }
 0x27e   :  { %v2478_v46 = vpop.f32.mrb[70].mxu1  ;;  %v1429_v56 = vadd.f32 %v2966_v55, %v1413_v42  ;;  %v2813_v42 = vpack.c.bf16 %v1804_v39, %v1803_v40  ;;  %v1806_v55 = vld [vmem:[%s4506_s10 + $0x38] sm:$0xff]  ;;  %v1808_v61 = vld [vmem:[%s4506_s10 + $0x48] sm:$0xff] }
 0x27f   :  { %v1393_v8 = vmul.f32 %v2478_v46, %v4240_v13  ;;  %v1330_v47 = vpop.f32.mrb[71].mxu1  ;;  %v1805_v46 = vld [vmem:[%s4506_s10 + $0x30] sm:$0xff] }
 0x280   :  { %v1392_v49 = vmul.f32 %v4240_v13, %v1330_v47  ;;  %2529 = vmatprep.mubr.f32.mxu0 %v1429_v56  ;;  %v2816_v56 = vpack.c.bf16 %v1806_v55, %v1805_v46  ;;  %v1807_v47 = vld [vmem:[%s4506_s10 + $0x40] sm:$0xff] }
 0x281   :  { %v1416_v31 = vadd.f32 %v4245_v15, %v1393_v8  ;;  %2530 = vmatmul.mubr.f32.gmra.mrb[84].mxu0 %v1430_v10  ;;  %v3003_v8 = vmov 0.0   ;;  %v2819_v10 = vpack.c.bf16 %v1808_v61, %v1807_v47 }
 0x282   :  { %v1415_v62 = vadd.f32 %v4245_v15, %v1392_v49  ;;  %v2481_v0 = vpop.f32.mrb[72].mxu1  ;;  %46 = vst [vmem:[#allocation2] sm:$0x3] %v3003_v8  ;;  %v1809_v49 = vld [vmem:[%s4506_s10 + $0x50] sm:$0xff]  ;;  %2579 = vmatprep.mubr.msk.f32.mxu1 %vm3004_vm0, %v3003_v8 }
 0x283   :  { %v1395_v12 = vmul.f32 %v2481_v0, %v4240_v13  ;;  %v1340_v54 = vpop.f32.mrb[73].mxu1  ;;  %v1432_v63 = vadd.f32 %v2969_v58, %v1416_v31  ;;  %v1810_v31 = vld [vmem:[%s4506_s10 + $0x58] sm:$0xff]  ;;  %v1811_v0 = vld [vmem:[%s4506_s10 + $0x60] sm:$0xff] }
 0x284   :  { %v1394_v57 = vmul.f32 %v4240_v13, %v1340_v54  ;;  %v1431_v60 = vadd.f32 %v2968_v11, %v1415_v62  ;;  %v2822_v62 = vpack.c.bf16 %v1810_v31, %v1809_v49  ;;  %v1814_v11 = vld [vmem:[%s4506_s10 + $0x78] sm:$0xff] }
 0x285   :  { %v1418_v16 = vadd.f32 %v4245_v15, %v1395_v12  ;;  %v1812_v12 = vld [vmem:[%s4506_s10 + $0x68] sm:$0xff] }
 0x286   :  { %v1417_v44 = vadd.f32 %v4245_v15, %v1394_v57  ;;  %v2484_v22 = vpop.f32.mrb[74].mxu1  ;;  %2532 = vmatprep.mubr.f32.mxu0 %v1431_v60  ;;  %v2825_v54 = vpack.c.bf16 %v1812_v12, %v1811_v0  ;;  %v1813_v57 = vld [vmem:[%s4506_s10 + $0x70] sm:$0xff] }
 0x287   :  { %v1397_v28 = vmul.f32 %v2484_v22, %v4240_v13  ;;  %v1350_v24 = vpop.f32.mrb[75].mxu1  ;;  %2533 = vmatmul.mubr.f32.gmra.mrb[86].mxu0 %v1432_v63  ;;  %v1434_v36 = vadd.f32 %v2971_v6, %v1418_v16  ;;  %v2828_v60 = vpack.c.bf16 %v1814_v11, %v1813_v57  ;;  %v4378_v16 = vld [vmem:[%s4504_s8] ss:$0 sm:$0xff] }
 0x288   :  { %v1396_v1 = vmul.f32 %v4240_v13, %v1350_v24  ;;  %v1433_v38 = vadd.f32 %v2970_v3, %v1417_v44  ;;  %v4383_v63 = vld [vmem:[%s4505_s9] ss:$0 sm:$0xff] }
 0x289   :  { %v1420_v19 = vadd.f32 %v4245_v15, %v1397_v28 }
 0x28a   :  { %v1419_v26 = vadd.f32 %v4245_v15, %v1396_v1  ;;  %v2487_v51 = vpop.f32.mrb[76].mxu1  ;;  %2535 = vmatprep.mubr.f32.mxu0 %v1433_v38 }
 0x28b   :  { %v1399_v59 = vmul.f32 %v2487_v51, %v4240_v13  ;;  %v1360_v7 = vpop.f32.mrb[77].mxu1  ;;  %2536 = vmatmul.mubr.f32.gmra.mrb[88].mxu0 %v1434_v36  ;;  %v1436_v9 = vadd.f32 %v2973_v18, %v1420_v19 }
 0x28c   :  { %v1398_v4 = vmul.f32 %v4240_v13, %v1360_v7  ;;  %v1435_v5 = vadd.f32 %v2972_v17, %v1419_v26 }
 0x28d   :  { %v1422_v14 = vadd.f32 %v4245_v15, %v1399_v59 }
 0x28e   :  { %v1421_v20 = vadd.f32 %v4245_v15, %v1398_v4  ;;  %v2490_v34 = vpop.f32.mrb[78].mxu1  ;;  %2538 = vmatprep.mubr.f32.mxu0 %v1435_v5 }
 0x28f   :  { %v1401_v21 = vmul.f32 %v2490_v34, %v4240_v13  ;;  %v1370_v37 = vpop.f32.mrb[79].mxu1  ;;  %2539 = vmatmul.mubr.f32.gmra.mrb[90].mxu0 %v1436_v9  ;;  %v1438_v32 = vadd.f32 %v2975_v29, %v1422_v14 }
 0x290   :  { %v1400_v25 = vmul.f32 %v4240_v13, %v1370_v37  ;;  %v1437_v35 = vadd.f32 %v2974_v23, %v1421_v20  ;;  %v2976_v13 = vld [vmem:[%s4496_s0 + $0x410] sm:$0xff] }
 0x291   :  { %v1424_v27 = vadd.f32 %v4245_v15, %v1401_v21 }
 0x292   :  { %v1423_v41 = vadd.f32 %v4245_v15, %v1400_v25  ;;  %2541 = vmatprep.mubr.f32.mxu0 %v1437_v35  ;;  %v1800_v15 = vld [vmem:[%s4506_s10 + $0x8] sm:$0xff]  ;;  %s3005_s10 = smov [#allocation3]  }
 0x293   :  { %2542 = vmatmul.mubr.f32.gmra.mrb[92].mxu0 %v1438_v32  ;;  %v1440_v48 = vadd.f32 %v2977_v33, %v1424_v27  ;;  %v2807_v2 = vpack.c.bf16 %v1800_v15, %v1799_v53  ;;  %s1899_s17 = sshll.u32 %s3005_s10, 4  ;;  %s1900_s17 = int_to_ptr.vmem [resolvable:$true] %s1899_s17 }
 0x294   :  { %v1439_v30 = vadd.f32 %v2976_v13, %v1423_v41  ;;  %s2978_s18 = scalar_lea.vmem %s1900_s17, 32  ;;  %p2983_p1 = scmp.lt.s32.totalorder %s1900_s17, %s1900_s17 }
 0x295   :  { %2808 = vmatpush3.bf16.msra.mxu1 %v2807_v2  ;;  %p2979_p0 = scmp.ne.s32.totalorder %s1900_s17, %s2978_s18  ;;  %p2984_p2 = scmp.lt.s32.totalorder %s2978_s18, %s2978_s18 }
 0x296   :  { %2544 = vmatprep.mubr.f32.mxu0 %v1439_v30  ;;  %2809 = vmatprep.subr.bf16.mxu1 %v3002_v52 }
 0x297   :  { %2545 = vmatmul.mubr.f32.gmra.mrb[94].mxu0 %v1440_v48  ;;  %p2985_p3 = por %p2984_p2, %p2983_p1 }
 0x299   :  { %2811 = vmatpush3.bf16.msra.mxu1 %v2810_v43  ;;  %p2986_p4 = pnand %p2985_p3, %p2979_p0 }
 0x29a   :  { %2812 = vmatprep.subr.bf16.mxu1 %v3002_v52 }
 0x29d   :  { %2814 = vmatpush3.bf16.msra.mxu1 %v2813_v42 }
 0x29e   :  { %2815 = vmatprep.subr.bf16.mxu1 %v3002_v52 }
 0x2a1   :  { %2817 = vmatpush3.bf16.msra.mxu1 %v2816_v56 }
 0x2a2   :  { %2818 = vmatprep.subr.bf16.mxu1 %v3002_v52 }
 0x2a5   :  { %2820 = vmatpush3.bf16.msra.mxu1 %v2819_v10 }
 0x2a6   :  { %2821 = vmatprep.subr.bf16.mxu1 %v3002_v52 }
 0x2a9   :  { %2823 = vmatpush3.bf16.msra.mxu1 %v2822_v62 }
 0x2aa   :  { %2824 = vmatprep.subr.bf16.mxu1 %v3002_v52 }
 0x2ad   :  { %2826 = vmatpush3.bf16.msra.mxu1 %v2825_v54 }
 0x2ae   :  { %2827 = vmatprep.subr.bf16.mxu1 %v3002_v52 }
 0x2b1   :  { %2829 = vmatpush3.bf16.msra.mxu1 %v2828_v60 }
 0x34c   :  { %v2525_v58 = vpop.f32.mrb[80].mxu0 }
 0x34d   :  { %v1610_v44 = vmul.f32 %v2525_v58, %v4378_v16  ;;  %v1523_v22 = vpop.f32.mrb[81].mxu0 }
 0x34e   :  { %v1609_v28 = vmul.f32 %v4378_v16, %v1523_v22 }
 0x34f   :  { %v4388_v24 = vadd.f32 %v4383_v63, %v1610_v44 }
 0x350   :  { %v4391_v1 = vadd.f32 %v4383_v63, %v1609_v28  ;;  %v2528_v3 = vpop.f32.mrb[82].mxu0 }
 0x351   :  { %v1930_v38 = vmul.f32 -1.442695, %v4388_v24  ;;  %v1612_v19 = vmul.f32 %v2528_v3, %v4378_v16  ;;  %v1533_v6 = vpop.f32.mrb[83].mxu0 }
 0x352   :  { %v1929_v36 = vmul.f32 -1.442695, %v4391_v1  ;;  %v1611_v26 = vmul.f32 %v4378_v16, %v1533_v6 }
 0x353   :  { %2898 = vpow2.f32 %v1930_v38  ;;  %v4398_v51 = vadd.f32 %v4383_v63, %v1612_v19 }
 0x354   :  { %2900 = vpow2.f32 %v1929_v36  ;;  %v4401_v59 = vadd.f32 %v4383_v63, %v1611_v26  ;;  %v2531_v7 = vpop.f32.mrb[84].mxu0 }
 0x355   :  { %v1932_v4 = vmul.f32 -1.442695, %v4398_v51  ;;  %v1614_v17 = vmul.f32 %v2531_v7, %v4378_v16  ;;  %v1543_v5 = vpop.f32.mrb[85].mxu0 }
 0x356   :  { %v1931_v14 = vmul.f32 -1.442695, %v4401_v59  ;;  %v1613_v18 = vmul.f32 %v4378_v16, %v1543_v5 }
 0x357   :  { %2902 = vpow2.f32 %v1932_v4  ;;  %v4408_v9 = vadd.f32 %v4383_v63, %v1614_v17 }
 0x358   :  { %2904 = vpow2.f32 %v1931_v14  ;;  %v4411_v20 = vadd.f32 %v4383_v63, %v1613_v18 }
 0x359   :  { %v1934_v34 = vmul.f32 -1.442695, %v4408_v9 }
 0x35a   :  { %v1933_v21 = vmul.f32 -1.442695, %v4411_v20  ;;  %v2534_v37 = vpop.f32.mrb[86].mxu0 }
 0x35b   :  { %2906 = vpow2.f32 %v1934_v34  ;;  %v1616_v25 = vmul.f32 %v2534_v37, %v4378_v16  ;;  %v1553_v23 = vpop.f32.mrb[87].mxu0 }
 0x35c   :  { %2908 = vpow2.f32 %v1933_v21  ;;  %v1615_v35 = vmul.f32 %v4378_v16, %v1553_v23 }
 0x35d   :  { %v2899_v27 = vpop.eup %2898  ;;  %v4418_v29 = vadd.f32 %v4383_v63, %v1616_v25 }
 0x35e   :  { %v2901_v32 = vpop.eup %2900  ;;  %v1697_v41 = vadd.f32 1.0, %v2899_v27  ;;  %v4421_v13 = vadd.f32 %v4383_v63, %v1615_v35  ;;  %v2537_v30 = vpop.f32.mrb[88].mxu0 }
 0x35f   :  { %v1696_v33 = vadd.f32 1.0, %v2901_v32  ;;  %v1936_v48 = vmul.f32 -1.442695, %v4418_v29  ;;  %v1618_v53 = vmul.f32 %v2537_v30, %v4378_v16  ;;  %v1563_v15 = vpop.f32.mrb[89].mxu0 }
 0x360   :  { %2910 = vrcp.f32 %v1697_v41  ;;  %v1935_v2 = vmul.f32 -1.442695, %v4421_v13  ;;  %v1617_v52 = vmul.f32 %v4378_v16, %v1563_v15 }
 0x361   :  { %v2903_v50 = vpop.eup %2902  ;;  %2912 = vrcp.f32 %v1696_v33  ;;  %v4428_v45 = vadd.f32 %v4383_v63, %v1618_v53 }
 0x362   :  { %v2905_v43 = vpop.eup %2904  ;;  %v1699_v40 = vadd.f32 1.0, %v2903_v50  ;;  %2914 = vpow2.f32 %v1936_v48  ;;  %v4431_v39 = vadd.f32 %v4383_v63, %v1617_v52  ;;  %v2540_v42 = vpop.f32.mrb[90].mxu0 }
 0x363   :  { %v1698_v46 = vadd.f32 1.0, %v2905_v43  ;;  %2916 = vpow2.f32 %v1935_v2  ;;  %v1938_v55 = vmul.f32 -1.442695, %v4428_v45  ;;  %v1620_v56 = vmul.f32 %v2540_v42, %v4378_v16  ;;  %v1573_v8 = vpop.f32.mrb[91].mxu0 }
 0x364   :  { %2918 = vrcp.f32 %v1699_v40  ;;  %v1937_v47 = vmul.f32 -1.442695, %v4431_v39  ;;  %v1619_v61 = vmul.f32 %v4378_v16, %v1573_v8 }
 0x365   :  { %v2907_v10 = vpop.eup %2906  ;;  %2920 = vrcp.f32 %v1698_v46  ;;  %v4438_v49 = vadd.f32 %v4383_v63, %v1620_v56 }
 0x366   :  { %v2909_v31 = vpop.eup %2908  ;;  %v1701_v62 = vadd.f32 1.0, %v2907_v10  ;;  %2922 = vpow2.f32 %v1938_v55  ;;  %v4441_v0 = vadd.f32 %v4383_v63, %v1619_v61  ;;  %v2543_v12 = vpop.f32.mrb[92].mxu0 }
 0x367   :  { %v1700_v54 = vadd.f32 1.0, %v2909_v31  ;;  %2924 = vpow2.f32 %v1937_v47  ;;  %v1940_v57 = vmul.f32 -1.442695, %v4438_v49  ;;  %v1622_v11 = vmul.f32 %v2543_v12, %v4378_v16  ;;  %v1583_v60 = vpop.f32.mrb[93].mxu0 }
 0x368   :  { %2926 = vrcp.f32 %v1701_v62  ;;  %v1939_v58 = vmul.f32 -1.442695, %v4441_v0  ;;  %v1621_v44 = vmul.f32 %v4378_v16, %v1583_v60 }
 0x369   :  { %2928 = vrcp.f32 %v1700_v54  ;;  %v4448_v22 = vadd.f32 %v4383_v63, %v1622_v11 }
 0x36a   :  { %v2911_v28 = vpop.eup %2910  ;;  %2930 = vpow2.f32 %v1940_v57  ;;  %v4451_v3 = vadd.f32 %v4383_v63, %v1621_v44  ;;  %v2546_v38 = vpop.f32.mrb[94].mxu0 }
 0x36b   :  { %v2913_v19 = vpop.eup %2912  ;;  %v1745_v6 = vmul.f32 %v2911_v28, %v4388_v24  ;;  %2932 = vpow2.f32 %v1939_v58  ;;  %v1942_v36 = vmul.f32 -1.442695, %v4448_v22  ;;  %v1624_v26 = vmul.f32 %v2546_v38, %v4378_v16  ;;  %v1593_v7 = vpop.f32.mrb[95].mxu0 }
 0x36c   :  { %v2915_v4 = vpop.eup %2914  ;;  %v1744_v17 = vmul.f32 %v2913_v19, %v4391_v1  ;;  %v1941_v5 = vmul.f32 -1.442695, %v4451_v3  ;;  %v1623_v14 = vmul.f32 %v4378_v16, %v1593_v7 }
 0x36d   :  { %v2917_v18 = vpop.eup %2916  ;;  %v1703_v34 = vadd.f32 1.0, %v2915_v4  ;;  %2934 = vpow2.f32 %v1942_v36  ;;  %v4460_v21 = vadd.f32 %v4383_v63, %v1624_v26 }
 0x36e   :  { %v2919_v24 = vpop.eup %2918  ;;  %v1761_v37 = vadd.f32 %v1745_v6, %v1744_v17  ;;  %v1702_v25 = vadd.f32 1.0, %v2917_v18  ;;  %2936 = vpow2.f32 %v1941_v5  ;;  %v4463_v23 = vadd.f32 %v4383_v63, %v1623_v14 }
 0x36f   :  { %v2921_v35 = vpop.eup %2920  ;;  %2938 = vrcp.f32 %v1703_v34  ;;  %v1944_v1 = vmul.f32 -1.442695, %v4460_v21  ;;  %v1747_v48 = vmul.f32 %v2919_v24, %v4398_v51 }
 0x370   :  { %v2923_v27 = vpop.eup %2922  ;;  %v1746_v16 = vmul.f32 %v2921_v35, %v4401_v59  ;;  %2940 = vrcp.f32 %v1702_v25  ;;  %v1943_v32 = vmul.f32 -1.442695, %v4463_v23 }
 0x371   :  { %v2925_v41 = vpop.eup %2924  ;;  %v1705_v30 = vadd.f32 1.0, %v2923_v27  ;;  %2942 = vpow2.f32 %v1944_v1 }
 0x372   :  { %v2927_v33 = vpop.eup %2926  ;;  %v1762_v53 = vadd.f32 %v1761_v37, %v1746_v16  ;;  %v1704_v15 = vadd.f32 1.0, %v2925_v41  ;;  %2944 = vpow2.f32 %v1943_v32 }
 0x373   :  { %v2929_v63 = vpop.eup %2928  ;;  %2946 = vrcp.f32 %v1705_v30  ;;  %v1749_v40 = vmul.f32 %v2927_v33, %v4408_v9 }
 0x374   :  { %v2931_v2 = vpop.eup %2930  ;;  %v1748_v52 = vmul.f32 %v2929_v63, %v4411_v20  ;;  %v1763_v50 = vadd.f32 %v1762_v53, %v1747_v48  ;;  %2948 = vrcp.f32 %v1704_v15  ;;  %v1760_v48 = vld [vmem:[#allocation2] sm:$0x3] }
 0x375   :  { %v2933_v59 = vpop.eup %2932  ;;  %v1707_v43 = vadd.f32 1.0, %v2931_v2 }
 0x376   :  { %v1764_v42 = vadd.f32 %v1763_v50, %v1748_v52  ;;  %v1706_v46 = vadd.f32 1.0, %v2933_v59 }
 0x377   :  { %v2935_v55 = vpop.eup %2934  ;;  %2950 = vrcp.f32 %v1707_v43 }
 0x378   :  { %v2937_v56 = vpop.eup %2936  ;;  %v1765_v51 = vadd.f32 %v1764_v42, %v1749_v40  ;;  %2952 = vrcp.f32 %v1706_v46  ;;  %v1709_v8 = vadd.f32 1.0, %v2935_v55 }
 0x379   :  { %v2939_v47 = vpop.eup %2938  ;;  %v1708_v61 = vadd.f32 1.0, %v2937_v56 }
 0x37a   :  { %v2941_v10 = vpop.eup %2940  ;;  %v1751_v9 = vmul.f32 %v2939_v47, %v4418_v29 }
 0x37b   :  { %v2943_v31 = vpop.eup %2942  ;;  %v1750_v20 = vmul.f32 %v2941_v10, %v4421_v13  ;;  %2954 = vrcp.f32 %v1708_v61 }
 0x37c   :  { %v2945_v62 = vpop.eup %2944  ;;  %2956 = vrcp.f32 %v1709_v8  ;;  %v1711_v12 = vadd.f32 1.0, %v2943_v31 }
 0x37d   :  { %v2947_v54 = vpop.eup %2946  ;;  %v1766_v57 = vadd.f32 %v1765_v51, %v1750_v20  ;;  %v1710_v11 = vadd.f32 1.0, %v2945_v62 }
 0x37e   :  { %v2949_v60 = vpop.eup %2948  ;;  %v1753_v58 = vmul.f32 %v2947_v54, %v4428_v45 }
 0x37f   :  { %v1767_v44 = vadd.f32 %v1766_v57, %v1751_v9  ;;  %v1752_v28 = vmul.f32 %v2949_v60, %v4431_v39  ;;  %2958 = vrcp.f32 %v1710_v11 }
 0x380   :  { %2960 = vrcp.f32 %v1711_v12 }
 0x381   :  { %v2951_v38 = vpop.eup %2950  ;;  %v1774_v19 = vadd.f32 %v1753_v58, %v1752_v28  ;;  %v1768_v17 = vrot.slane %v1767_v44, 4 }
 0x382   :  { %v2953_v13 = vpop.eup %2952  ;;  %v1755_v26 = vmul.f32 %v2951_v38, %v4438_v49 }
 0x383   :  { %v1754_v6 = vmul.f32 %v2953_v13, %v4441_v0  ;;  %v1769_v24 = vadd.f32 %v1768_v17, %v1767_v44 }
 0x385   :  { %v2955_v36 = vpop.eup %2954  ;;  %v1775_v7 = vadd.f32 %v1774_v19, %v1754_v6  ;;  %v1770_v35 = vrot.slane %v1769_v24, 2 }
 0x386   :  { %v2957_v29 = vpop.eup %2956  ;;  %v1756_v4 = vmul.f32 %v2955_v36, %v4451_v3 }
 0x387   :  { %v1776_v5 = vadd.f32 %v1775_v7, %v1755_v26  ;;  %v1757_v14 = vmul.f32 %v2957_v29, %v4448_v22  ;;  %v1771_v27 = vadd.f32 %v1770_v35, %v1769_v24 }
 0x389   :  { %v2959_v45 = vpop.eup %2958  ;;  %v1777_v39 = vadd.f32 %v1776_v5, %v1756_v4  ;;  %v1772_v32 = vrot.slane %v1771_v27, 1 }
 0x38a   :  { %v2961_v18 = vpop.eup %2960  ;;  %v1758_v34 = vmul.f32 %v2959_v45, %v4463_v23 }
 0x38b   :  { %v1778_v37 = vadd.f32 %v1777_v39, %v1757_v14  ;;  %v1759_v0 = vmul.f32 %v2961_v18, %v4460_v21  ;;  %v1773_v22 = vadd.f32 %v1772_v32, %v1771_v27  ;;  %v1945_v21 = vld [vmem:[%s4507_s11] ss:$0 sm:$0xff] }
 0x38d   :  { %v1779_v25 = vadd.f32 %v1778_v37, %v1758_v34 }
 0x38f   :  { %v1780_v49 = vadd.f32 %v1779_v25, %v1759_v0 }
 0x391   :  { %v1781_v1 = vrot.slane %v1780_v49, 4 }
 0x393   :  { %v1782_v16 = vadd.f32 %v1781_v1, %v1780_v49 }
 0x395   :  { %v1783_v3 = vrot.slane %v1782_v16, 2 }
 0x397   :  { %v1784_v41 = vadd.f32 %v1783_v3, %v1782_v16 }
 0x399   :  { %v1785_v30 = vrot.slane %v1784_v41, 1 }
 0x39b   :  { %v1786_v33 = vadd.f32 %v1785_v30, %v1784_v41 }
 0x39d   :  { %v1790_v53 = vsel %vm1789_vm1, %v1786_v33, %v1773_v22 }
 0x39e   :  { %v1792_v23 = vadd.f32 %v1790_v53, %v1760_v48 }
 0x3a0   :  { %1793 = vst [vmem:[#allocation2] sm:$0x3] %v1792_v23 }
 0x3a7   :  { %v1797_v15 = vld [vmem:[#allocation2] sm:$0x3] }
 0x3a8   :  { %v1798_v63 = vmul.f32 0.015625, %v1797_v15 }
 0x3aa   :  { %2580 = vmatmul.mubr.f32.vlgmr.msra.gmra.mrb[80].mxu1 %v1798_v63 }
 0x47d   :  { %v1888_v2 = vpop.f32.mrb[80].mxu1 }
 0x47e   :  { %v1889_v52 = vadd.f32 %v1945_v21, %v1888_v2  ;;  %v2581_v50 = vpop.f32.mrb[81].mxu1 }
 0x480   :  { %1892 = vst [vmem:[#allocation3] sm:$0x3] %v1889_v52 }
 0x481   :  { %2989 = shalt.err (!%p2986_p4)
}
 0x482   :  { %s2990_s21 = scalar_lea.hbm %s4508_s12, 32 }
 0x483   :  { %p2991_p5 = scmp.ne.s32.totalorder %s4508_s12, %s2990_s21  ;;  %p2994_p6 = scmp.lt.u32.totalorder %s2990_s21, %s4508_s12 }
 0x485   :  { %p2996_p7 = pnand %p2994_p6, %p2991_p5 }
 0x487   :  { %2999 = shalt.err (!%p2996_p7)
}
 0x488   :  { %1902 = dma.vmem_to_hbm [thread:$0]  %s1900_s17, 32, %s4508_s12, [#allocation4]  }
 0x489   :  { %3000 = dma.done.wait [#allocation4], 32  }
 0x48a   :  { %3001 = vsyncadd [#allocation4], 4294967264 }
 0x48b   :  { %1906 = vsyncpa [#allocation4], 1 }

</bundles_post_ra>
